<compile_context>
chip_gen: v7x
topology: tpu7x:2x2x1
jax: 0.10.0
libtpu: 0.0.40
codegen_flags: <defaults>
</compile_context>

<pallas_src>
import jax
import jax.numpy as jnp
from jax.experimental import pallas as pl
from jax.experimental.pallas import tpu as pltpu  # noqa: F401  (TPU backend)

EMB = 32                                  # embedding_size (small for the demo)
NUM_FEATS = 4
FEATURE_TYPES = ("ctd", "kmer", "doc2vec", "role2vec")
BN_EPS = 1e-5
NEG_INF = -1e30


# ----------------------------------------------------------------------------
# Fused forward kernel (single pallas_call, everything in VMEM / vregs)
# ----------------------------------------------------------------------------
def _fused_forward_kernel(
    x_lnc_ref, x_mi_ref,
    w_lnc_ref, b_lnc_ref, w_mi_ref, b_mi_ref,
    lnc_a_ref, lnc_b_ref, mi_a_ref, mi_b_ref,
    adj_bias_ref,
    c1_w_ref, c1_as_ref, c1_ad_ref, c1_b_ref, n1_g_ref, n1_b_ref,
    c2_w_ref, c2_as_ref, c2_ad_ref, c2_b_ref, n2_g_ref, n2_b_ref,
    c3_w_ref, c3_as_ref, c3_ad_ref, c3_b_ref,
    layer_a_ref, layer_b_ref,
    u_idx_ref, v_idx_ref,
    m_g1_ref, m_be1_ref, m_w1_ref, m_b1_ref,
    m_g2_ref, m_be2_ref, m_w2_ref, m_b2_ref,
    o_ref,
):
    # ---- packed projection (lane-dense (N, 4E) slab) + per-feature attention ----
    def proj_and_feature_att(x, w_ref, b_ref, a_ref, ab_ref):
        slab = jnp.dot(x, w_ref[...], preferred_element_type=jnp.float32) + b_ref[...]
        a = a_ref[...]                                       # (1, E)
        bias = ab_ref[0, 0]
        out = jnp.zeros((x.shape[0], EMB), jnp.float32)
        for f in range(NUM_FEATS):                           # static unroll
            pf = slab[:, f * EMB:(f + 1) * EMB]              # (N, E) static lane slice
            s = jnp.sum(pf * a, axis=-1, keepdims=True)      # (N, 1) VPU reduce
            out = out + jax.nn.sigmoid(s + bias) * pf
        return out

    lnc = proj_and_feature_att(x_lnc_ref[...], w_lnc_ref, b_lnc_ref, lnc_a_ref, lnc_b_ref)
    mi = proj_and_feature_att(x_mi_ref[...], w_mi_ref, b_mi_ref, mi_a_ref, mi_b_ref)
    x0 = jnp.concatenate([lnc, mi], axis=0)                  # (N, E)
    # TODO(synk): F.dropout(x0, p=0.1) is stochastic; treated as identity here.

    adj_bias = adj_bias_ref[...]                             # (N, N) additive 0 / -1e30

    # ---- single-head GAT layer (NodeAttLayer stand-in) ----
    def gat(x, w_ref, as_ref, ad_ref, b_ref):
        h = jnp.dot(x, w_ref[...], preferred_element_type=jnp.float32)     # (N, E) MXU
        # attention logits via VPU reductions (keep the MXU for the real matmuls)
        s_dst = jnp.sum(h * ad_ref[...], axis=-1, keepdims=True)            # (N, 1)
        s_src = jnp.sum(h[None, :, :] * as_ref[...][:, None, :], axis=-1)   # (1, N)
        e = s_dst + s_src                                                   # (N, N)
        e = jnp.where(e > 0, e, 0.2 * e)                                    # LeakyReLU(0.2)
        e = e + adj_bias                                                    # mask non-edges
        e = e - jnp.max(e, axis=-1, keepdims=True)
        p = jnp.exp(e)
        inv = pl.reciprocal(jnp.sum(p, axis=-1, keepdims=True), approx=True)
        alpha = p * inv                                                     # row softmax
        return jnp.dot(alpha, h, preferred_element_type=jnp.float32) + b_ref[...]

    # ---- BatchNorm1d (batch stats) fused with optional ReLU ----
    def bn(x, g_ref, b_ref, relu):
        m = jnp.mean(x, axis=0, keepdims=True)
        v = jnp.mean(jnp.square(x - m), axis=0, keepdims=True)
        y = (x - m) * jax.lax.rsqrt(v + BN_EPS) * g_ref[...] + b_ref[...]
        return jnp.maximum(y, 0.0) if relu else y

    x1 = gat(x0, c1_w_ref, c1_as_ref, c1_ad_ref, c1_b_ref)
    x1n = bn(x1, n1_g_ref, n1_b_ref, relu=True)
    x2 = gat(x1n, c2_w_ref, c2_as_ref, c2_ad_ref, c2_b_ref)
    x2n = bn(x2, n2_g_ref, n2_b_ref, relu=True)
    x3 = gat(x2n, c3_w_ref, c3_as_ref, c3_ad_ref, c3_b_ref)

    # ---- layer attention over [x0, x1, x2, x3] (all resident, no stack/HBM) ----
    la = layer_a_ref[...]
    lb = layer_b_ref[0, 0]
    z = jnp.zeros_like(x0)
    for xl in (x0, x1, x2, x3):
        s = jnp.sum(xl * la, axis=-1, keepdims=True)         # (N, 1)
        z = z + jax.nn.sigmoid(s + lb) * xl                  # (N, E)

    # ---- in-kernel pair gather (one-hot MXU gather from VMEM-resident z) ----
    n_nodes = z.shape[0]
    b_pairs = u_idx_ref.shape[0]
    cols = jax.lax.broadcasted_iota(jnp.int32, (b_pairs, n_nodes), 1)
    oh_u = (cols == u_idx_ref[...]).astype(jnp.float32)      # (B, N)
    oh_v = (cols == v_idx_ref[...]).astype(jnp.float32)
    u = jnp.dot(oh_u, z, preferred_element_type=jnp.float32)
    v = jnp.dot(oh_v, z, preferred_element_type=jnp.float32)
    uv = jnp.concatenate([u, v], axis=1)                     # (B, 2E)

    # ---- MLP head: BN -> Linear -> (Dropout=id) -> LeakyReLU -> BN -> Linear -> Sigmoid
    y = bn(uv, m_g1_ref, m_be1_ref, relu=False)
    y = jnp.dot(y, m_w1_ref[...], preferred_element_type=jnp.float32) + m_b1_ref[...]
    # TODO(synk): nn.Dropout(0.1) is stochastic; treated as identity here.
    y = jnp.where(y > 0, y, 0.01 * y)                        # LeakyReLU(0.01)
    y = bn(y, m_g2_ref, m_be2_ref, relu=False)
    y = jnp.dot(y, m_w2_ref[...], preferred_element_type=jnp.float32) + m_b2_ref[...]
    o_ref[...] = jax.nn.sigmoid(y)                           # (B, 1)


# ----------------------------------------------------------------------------
# Forward wrapper (all compute in the single Pallas kernel)
# ----------------------------------------------------------------------------
@jax.jit
def mgcat_forward(params, x_lnc_packed, x_mi_packed, adj_bias, idx):
    b = idx.shape[1]
    u_idx = idx[0].reshape(b, 1).astype(jnp.int32)
    v_idx = idx[1].reshape(b, 1).astype(jnp.int32)
    out = pl.pallas_call(
        _fused_forward_kernel,
        out_shape=jax.ShapeDtypeStruct((b, 1), jnp.float32),
    )(
        x_lnc_packed, x_mi_packed,
        params["lnc_w"], params["lnc_b"], params["mi_w"], params["mi_b"],
        params["lnc_att_a"], params["lnc_att_b"],
        params["mi_att_a"], params["mi_att_b"],
        adj_bias,
        params["c1_w"], params["c1_as"], params["c1_ad"], params["c1_bias"],
        params["n1_g"], params["n1_b"],
        params["c2_w"], params["c2_as"], params["c2_ad"], params["c2_bias"],
        params["n2_g"], params["n2_b"],
        params["c3_w"], params["c3_as"], params["c3_ad"], params["c3_bias"],
        params["layer_att_a"], params["layer_att_b"],
        u_idx, v_idx,
        params["mlp_bn1_g"], params["mlp_bn1_b"], params["mlp_w1"], params["mlp_b1"],
        params["mlp_bn2_g"], params["mlp_bn2_b"], params["mlp_w2"], params["mlp_b2"],
    )
    return jnp.squeeze(out, axis=-1)


# ----------------------------------------------------------------------------
# Parameter init (deterministic, PyTorch-Linear-style uniform)
# ----------------------------------------------------------------------------
def _init_linear(key, din, dout):
    k1, k2 = jax.random.split(key)
    bound = 1.0 / float(din) ** 0.5
    w = jax.random.uniform(k1, (din, dout), jnp.float32, -bound, bound)
    b = jax.random.uniform(k2, (dout,), jnp.float32, -bound, bound)
    return w, b


def _init_packed_proj(key, dims, emb):
    # block-diagonal packing: concat_f(x_f) @ W_pack == concat_f(x_f @ W_f)
    keys = jax.random.split(key, len(FEATURE_TYPES))
    total_in = sum(dims[f] for f in FEATURE_TYPES)
    w_pack = jnp.zeros((total_in, len(FEATURE_TYPES) * emb), jnp.float32)
    b_parts, row = [], 0
    for i, f in enumerate(FEATURE_TYPES):
        w, b = _init_linear(keys[i], dims[f], emb)
        w_pack = w_pack.at[row:row + dims[f], i * emb:(i + 1) * emb].set(w)
        b_parts.append(b)
        row += dims[f]
    return w_pack, jnp.concatenate(b_parts).reshape(1, -1)


def init_params(key, lnc_dims, mi_dims, emb):
    keys = jax.random.split(key, 16)

    def init_att(k, d):
        w, b = _init_linear(k, d, 1)
        return w.T, b.reshape(1, 1)                     # a: (1, d), b: (1, 1)

    def init_gat(k, din, dout):
        k1, k2, k3 = jax.random.split(k, 3)
        bound = 1.0 / float(din) ** 0.5
        return (jax.random.uniform(k1, (din, dout), jnp.float32, -bound, bound),
                jax.random.uniform(k2, (1, dout), jnp.float32, -bound, bound),
                jax.random.uniform(k3, (1, dout), jnp.float32, -bound, bound),
                jnp.zeros((1, dout), jnp.float32))

    lnc_w, lnc_b = _init_packed_proj(keys[0], lnc_dims, emb)
    mi_w, mi_b = _init_packed_proj(keys[1], mi_dims, emb)
    la_a, la_b = init_att(keys[2], emb)
    ma_a, ma_b = init_att(keys[3], emb)
    xa_a, xa_b = init_att(keys[4], emb)
    c1 = init_gat(keys[5], emb, emb)
    c2 = init_gat(keys[6], emb, emb)
    c3 = init_gat(keys[7], emb, emb)
    w1, b1 = _init_linear(keys[8], 2 * emb, emb)
    w2, b2 = _init_linear(keys[9], emb, 1)

    return {
        "lnc_w": lnc_w, "lnc_b": lnc_b, "mi_w": mi_w, "mi_b": mi_b,
        "lnc_att_a": la_a, "lnc_att_b": la_b,
        "mi_att_a": ma_a, "mi_att_b": ma_b,
        "layer_att_a": xa_a, "layer_att_b": xa_b,
        "c1_w": c1[0], "c1_as": c1[1], "c1_ad": c1[2], "c1_bias": c1[3],
        "c2_w": c2[0], "c2_as": c2[1], "c2_ad": c2[2], "c2_bias": c2[3],
        "c3_w": c3[0], "c3_as": c3[1], "c3_ad": c3[2], "c3_bias": c3[3],
        "n1_g": jnp.ones((1, emb), jnp.float32), "n1_b": jnp.zeros((1, emb), jnp.float32),
        "n2_g": jnp.ones((1, emb), jnp.float32), "n2_b": jnp.zeros((1, emb), jnp.float32),
        "mlp_bn1_g": jnp.ones((1, 2 * emb), jnp.float32),
        "mlp_bn1_b": jnp.zeros((1, 2 * emb), jnp.float32),
        "mlp_w1": w1, "mlp_b1": b1.reshape(1, -1),
        "mlp_bn2_g": jnp.ones((1, emb), jnp.float32),
        "mlp_bn2_b": jnp.zeros((1, emb), jnp.float32),
        "mlp_w2": w2, "mlp_b2": b2.reshape(1, -1),
    }


# ----------------------------------------------------------------------------
# Demo
# ----------------------------------------------------------------------------
if __name__ == "__main__":
    key = jax.random.PRNGKey(0)
    k_feat, k_param = jax.random.split(key)

    n_lnc, n_mi = 8, 8
    n_total = n_lnc + n_mi
    lnc_dims = {"ctd": 10, "kmer": 16, "doc2vec": 24, "role2vec": 12}
    mi_dims = {"ctd": 14, "kmer": 16, "doc2vec": 20, "role2vec": 12}

    fkeys = jax.random.split(k_feat, 8)
    raw_features = {
        "lncRNA": {f: jax.random.normal(fkeys[i], (n_lnc, lnc_dims[f]), jnp.float32)
                   for i, f in enumerate(FEATURE_TYPES)},
        "miRNA": {f: jax.random.normal(fkeys[4 + i], (n_mi, mi_dims[f]), jnp.float32)
                  for i, f in enumerate(FEATURE_TYPES)},
    }
    # packed (concat-along-features) inputs for the block-diagonal projection
    x_lnc_packed = jnp.concatenate([raw_features["lncRNA"][f] for f in FEATURE_TYPES], axis=1)
    x_mi_packed = jnp.concatenate([raw_features["miRNA"][f] for f in FEATURE_TYPES], axis=1)

    # deterministic bipartite edge_index (2, num_edges): lncRNA i <-> miRNA nodes
    src, dst = [], []
    for i in range(n_lnc):
        for j in (i % n_mi, (i + 3) % n_mi):
            m = n_lnc + j
            src += [i, m]
            dst += [m, i]
    edge_index = jnp.array([src, dst], dtype=jnp.int32)       # (2, 32)

    # dense adjacency mask: adj[dst, src] = 1 (messages flow src -> dst) + self-loops
    adj = jnp.zeros((n_total, n_total), jnp.float32)
    adj = adj.at[edge_index[1], edge_index[0]].set(1.0)
    adj = jnp.maximum(adj, jnp.eye(n_total, dtype=jnp.float32))
    # precomputed additive edge bias, fetched once and reused by all 3 GAT layers
    adj_bias = jnp.where(adj > 0.5, 0.0, NEG_INF).astype(jnp.float32)

    # candidate (lncRNA, miRNA) pairs to score
    idx = jnp.array([[0, 1, 2, 3, 4, 5],
                     [8, 9, 10, 11, 12, 13]], dtype=jnp.int32)  # (2, 6)

    params = init_params(k_param, lnc_dims, mi_dims, EMB)

    out = mgcat_forward(params, x_lnc_packed, x_mi_packed, adj_bias, idx)
    out = jax.block_until_ready(out)
    assert out.shape == (6,)
    assert bool(jnp.all(jnp.isfinite(out)))
    assert bool(jnp.all((out >= 0.0) & (out <= 1.0)))
    print("KERNEL_OK")
</pallas_src>

<mosaic_0001>
module attributes {stable_mosaic.version = 11 : i64} {
  func.func @_fused_forward_kernel(%arg0: memref<8x62xf32, #tpu.memory_space<vmem>>, %arg1: memref<8x62xf32, #tpu.memory_space<vmem>>, %arg2: memref<62x128xf32, #tpu.memory_space<vmem>>, %arg3: memref<1x128xf32, #tpu.memory_space<vmem>>, %arg4: memref<62x128xf32, #tpu.memory_space<vmem>>, %arg5: memref<1x128xf32, #tpu.memory_space<vmem>>, %arg6: memref<1x32xf32, #tpu.memory_space<vmem>>, %arg7: memref<1x1xf32, #tpu.memory_space<vmem>>, %arg8: memref<1x32xf32, #tpu.memory_space<vmem>>, %arg9: memref<1x1xf32, #tpu.memory_space<vmem>>, %arg10: memref<16x16xf32, #tpu.memory_space<vmem>>, %arg11: memref<32x32xf32, #tpu.memory_space<vmem>>, %arg12: memref<1x32xf32, #tpu.memory_space<vmem>>, %arg13: memref<1x32xf32, #tpu.memory_space<vmem>>, %arg14: memref<1x32xf32, #tpu.memory_space<vmem>>, %arg15: memref<1x32xf32, #tpu.memory_space<vmem>>, %arg16: memref<1x32xf32, #tpu.memory_space<vmem>>, %arg17: memref<32x32xf32, #tpu.memory_space<vmem>>, %arg18: memref<1x32xf32, #tpu.memory_space<vmem>>, %arg19: memref<1x32xf32, #tpu.memory_space<vmem>>, %arg20: memref<1x32xf32, #tpu.memory_space<vmem>>, %arg21: memref<1x32xf32, #tpu.memory_space<vmem>>, %arg22: memref<1x32xf32, #tpu.memory_space<vmem>>, %arg23: memref<32x32xf32, #tpu.memory_space<vmem>>, %arg24: memref<1x32xf32, #tpu.memory_space<vmem>>, %arg25: memref<1x32xf32, #tpu.memory_space<vmem>>, %arg26: memref<1x32xf32, #tpu.memory_space<vmem>>, %arg27: memref<1x32xf32, #tpu.memory_space<vmem>>, %arg28: memref<1x1xf32, #tpu.memory_space<vmem>>, %arg29: memref<6x1xi32, #tpu.memory_space<vmem>>, %arg30: memref<6x1xi32, #tpu.memory_space<vmem>>, %arg31: memref<1x64xf32, #tpu.memory_space<vmem>>, %arg32: memref<1x64xf32, #tpu.memory_space<vmem>>, %arg33: memref<64x32xf32, #tpu.memory_space<vmem>>, %arg34: memref<1x32xf32, #tpu.memory_space<vmem>>, %arg35: memref<1x32xf32, #tpu.memory_space<vmem>>, %arg36: memref<1x32xf32, #tpu.memory_space<vmem>>, %arg37: memref<32x1xf32, #tpu.memory_space<vmem>>, %arg38: memref<1x1xf32, #tpu.memory_space<vmem>>, %arg39: memref<6x1xf32, #tpu.memory_space<vmem>>) attributes {dimension_semantics = [], scalar_prefetch = 0 : i64, scratch_operands = 0 : i64, tpu.core_type = #tpu.core_type<tc>} {
    %c0 = arith.constant 0 : index
    %c0_0 = arith.constant 0 : index
    %0 = vector.load %arg0[%c0, %c0_0] : memref<8x62xf32, #tpu.memory_space<vmem>>, vector<8x62xf32>
    %c0_1 = arith.constant 0 : index
    %c0_2 = arith.constant 0 : index
    %1 = vector.load %arg2[%c0_1, %c0_2] : memref<62x128xf32, #tpu.memory_space<vmem>>, vector<62x128xf32>
    %cst = arith.constant dense<0.000000e+00> : vector<8x128xf32>
    %2 = tpu.matmul %0, %1, %cst {dimension_numbers = #tpu.dot_dimension_numbers<[1], [0], [0], [1], [0, 0, 1, 1], [], []>} : vector<8x62xf32>, vector<62x128xf32>, vector<8x128xf32> -> vector<8x128xf32>
    %c0_3 = arith.constant 0 : index
    %c0_4 = arith.constant 0 : index
    %3 = vector.load %arg3[%c0_3, %c0_4] : memref<1x128xf32, #tpu.memory_space<vmem>>, vector<1x128xf32>
    %4 = vector.broadcast %3 : vector<1x128xf32> to vector<8x128xf32>
    %5 = arith.addf %2, %4 : vector<8x128xf32>
    %c0_5 = arith.constant 0 : index
    %c0_6 = arith.constant 0 : index
    %6 = vector.load %arg6[%c0_5, %c0_6] : memref<1x32xf32, #tpu.memory_space<vmem>>, vector<1x32xf32>
    %c0_7 = arith.constant 0 : index
    %c0_8 = arith.constant 0 : index
    %7 = vector.load %arg7[%c0_7, %c0_8] : memref<1x1xf32, #tpu.memory_space<vmem>>, vector<1x1xf32>
    %8 = vector.extract %7[0, 0] : f32 from vector<1x1xf32>
    %cst_9 = arith.constant 0.000000e+00 : f32
    %9 = vector.broadcast %cst_9 : f32 to vector<8x32xf32>
    %10 = vector.extract_strided_slice %5 {offsets = [0, 0], sizes = [8, 32], strides = [1, 1]} : vector<8x128xf32> to vector<8x32xf32>
    %11 = vector.broadcast %6 : vector<1x32xf32> to vector<8x32xf32>
    %12 = arith.mulf %10, %11 : vector<8x32xf32>
    %cst_10 = arith.constant dense<0.000000e+00> : vector<8xf32>
    %13 = vector.multi_reduction <add>, %12, %cst_10 [1] : vector<8x32xf32> to vector<8xf32>
    %14 = vector.shape_cast %13 : vector<8xf32> to vector<8x1xf32>
    %15 = vector.broadcast %8 : f32 to vector<8x1xf32>
    %16 = arith.addf %14, %15 : vector<8x1xf32>
    %17 = arith.negf %16 : vector<8x1xf32>
    %18 = math.exp %17 : vector<8x1xf32>
    %cst_11 = arith.constant 1.000000e+00 : f32
    %19 = vector.broadcast %cst_11 : f32 to vector<8x1xf32>
    %20 = arith.addf %19, %18 : vector<8x1xf32>
    %21 = arith.divf %19, %20 : vector<8x1xf32>
    %22 = vector.broadcast %21 : vector<8x1xf32> to vector<8x32xf32>
    %23 = arith.mulf %22, %10 : vector<8x32xf32>
    %24 = arith.addf %9, %23 : vector<8x32xf32>
    %25 = vector.extract_strided_slice %5 {offsets = [0, 32], sizes = [8, 32], strides = [1, 1]} : vector<8x128xf32> to vector<8x32xf32>
    %26 = vector.broadcast %6 : vector<1x32xf32> to vector<8x32xf32>
    %27 = arith.mulf %25, %26 : vector<8x32xf32>
    %cst_12 = arith.constant dense<0.000000e+00> : vector<8xf32>
    %28 = vector.multi_reduction <add>, %27, %cst_12 [1] : vector<8x32xf32> to vector<8xf32>
    %29 = vector.shape_cast %28 : vector<8xf32> to vector<8x1xf32>
    %30 = vector.broadcast %8 : f32 to vector<8x1xf32>
    %31 = arith.addf %29, %30 : vector<8x1xf32>
    %32 = arith.negf %31 : vector<8x1xf32>
    %33 = math.exp %32 : vector<8x1xf32>
    %cst_13 = arith.constant 1.000000e+00 : f32
    %34 = vector.broadcast %cst_13 : f32 to vector<8x1xf32>
    %35 = arith.addf %34, %33 : vector<8x1xf32>
    %36 = arith.divf %34, %35 : vector<8x1xf32>
    %37 = vector.broadcast %36 : vector<8x1xf32> to vector<8x32xf32>
    %38 = arith.mulf %37, %25 : vector<8x32xf32>
    %39 = arith.addf %24, %38 : vector<8x32xf32>
    %40 = vector.extract_strided_slice %5 {offsets = [0, 64], sizes = [8, 32], strides = [1, 1]} : vector<8x128xf32> to vector<8x32xf32>
    %41 = vector.broadcast %6 : vector<1x32xf32> to vector<8x32xf32>
    %42 = arith.mulf %40, %41 : vector<8x32xf32>
    %cst_14 = arith.constant dense<0.000000e+00> : vector<8xf32>
    %43 = vector.multi_reduction <add>, %42, %cst_14 [1] : vector<8x32xf32> to vector<8xf32>
    %44 = vector.shape_cast %43 : vector<8xf32> to vector<8x1xf32>
    %45 = vector.broadcast %8 : f32 to vector<8x1xf32>
    %46 = arith.addf %44, %45 : vector<8x1xf32>
    %47 = arith.negf %46 : vector<8x1xf32>
    %48 = math.exp %47 : vector<8x1xf32>
    %cst_15 = arith.constant 1.000000e+00 : f32
    %49 = vector.broadcast %cst_15 : f32 to vector<8x1xf32>
    %50 = arith.addf %49, %48 : vector<8x1xf32>
    %51 = arith.divf %49, %50 : vector<8x1xf32>
    %52 = vector.broadcast %51 : vector<8x1xf32> to vector<8x32xf32>
    %53 = arith.mulf %52, %40 : vector<8x32xf32>
    %54 = arith.addf %39, %53 : vector<8x32xf32>
    %55 = vector.extract_strided_slice %5 {offsets = [0, 96], sizes = [8, 32], strides = [1, 1]} : vector<8x128xf32> to vector<8x32xf32>
    %56 = vector.broadcast %6 : vector<1x32xf32> to vector<8x32xf32>
    %57 = arith.mulf %55, %56 : vector<8x32xf32>
    %cst_16 = arith.constant dense<0.000000e+00> : vector<8xf32>
    %58 = vector.multi_reduction <add>, %57, %cst_16 [1] : vector<8x32xf32> to vector<8xf32>
    %59 = vector.shape_cast %58 : vector<8xf32> to vector<8x1xf32>
    %60 = vector.broadcast %8 : f32 to vector<8x1xf32>
    %61 = arith.addf %59, %60 : vector<8x1xf32>
    %62 = arith.negf %61 : vector<8x1xf32>
    %63 = math.exp %62 : vector<8x1xf32>
    %cst_17 = arith.constant 1.000000e+00 : f32
    %64 = vector.broadcast %cst_17 : f32 to vector<8x1xf32>
    %65 = arith.addf %64, %63 : vector<8x1xf32>
    %66 = arith.divf %64, %65 : vector<8x1xf32>
    %67 = vector.broadcast %66 : vector<8x1xf32> to vector<8x32xf32>
    %68 = arith.mulf %67, %55 : vector<8x32xf32>
    %69 = arith.addf %54, %68 : vector<8x32xf32>
    %c0_18 = arith.constant 0 : index
    %c0_19 = arith.constant 0 : index
    %70 = vector.load %arg1[%c0_18, %c0_19] : memref<8x62xf32, #tpu.memory_space<vmem>>, vector<8x62xf32>
    %c0_20 = arith.constant 0 : index
    %c0_21 = arith.constant 0 : index
    %71 = vector.load %arg4[%c0_20, %c0_21] : memref<62x128xf32, #tpu.memory_space<vmem>>, vector<62x128xf32>
    %cst_22 = arith.constant dense<0.000000e+00> : vector<8x128xf32>
    %72 = tpu.matmul %70, %71, %cst_22 {dimension_numbers = #tpu.dot_dimension_numbers<[1], [0], [0], [1], [0, 0, 1, 1], [], []>} : vector<8x62xf32>, vector<62x128xf32>, vector<8x128xf32> -> vector<8x128xf32>
    %c0_23 = arith.constant 0 : index
    %c0_24 = arith.constant 0 : index
    %73 = vector.load %arg5[%c0_23, %c0_24] : memref<1x128xf32, #tpu.memory_space<vmem>>, vector<1x128xf32>
    %74 = vector.broadcast %73 : vector<1x128xf32> to vector<8x128xf32>
    %75 = arith.addf %72, %74 : vector<8x128xf32>
    %c0_25 = arith.constant 0 : index
    %c0_26 = arith.constant 0 : index
    %76 = vector.load %arg8[%c0_25, %c0_26] : memref<1x32xf32, #tpu.memory_space<vmem>>, vector<1x32xf32>
    %c0_27 = arith.constant 0 : index
    %c0_28 = arith.constant 0 : index
    %77 = vector.load %arg9[%c0_27, %c0_28] : memref<1x1xf32, #tpu.memory_space<vmem>>, vector<1x1xf32>
    %78 = vector.extract %77[0, 0] : f32 from vector<1x1xf32>
    %cst_29 = arith.constant 0.000000e+00 : f32
    %79 = vector.broadcast %cst_29 : f32 to vector<8x32xf32>
    %80 = vector.extract_strided_slice %75 {offsets = [0, 0], sizes = [8, 32], strides = [1, 1]} : vector<8x128xf32> to vector<8x32xf32>
    %81 = vector.broadcast %76 : vector<1x32xf32> to vector<8x32xf32>
    %82 = arith.mulf %80, %81 : vector<8x32xf32>
    %cst_30 = arith.constant dense<0.000000e+00> : vector<8xf32>
    %83 = vector.multi_reduction <add>, %82, %cst_30 [1] : vector<8x32xf32> to vector<8xf32>
    %84 = vector.shape_cast %83 : vector<8xf32> to vector<8x1xf32>
    %85 = vector.broadcast %78 : f32 to vector<8x1xf32>
    %86 = arith.addf %84, %85 : vector<8x1xf32>
    %87 = arith.negf %86 : vector<8x1xf32>
    %88 = math.exp %87 : vector<8x1xf32>
    %cst_31 = arith.constant 1.000000e+00 : f32
    %89 = vector.broadcast %cst_31 : f32 to vector<8x1xf32>
    %90 = arith.addf %89, %88 : vector<8x1xf32>
    %91 = arith.divf %89, %90 : vector<8x1xf32>
    %92 = vector.broadcast %91 : vector<8x1xf32> to vector<8x32xf32>
    %93 = arith.mulf %92, %80 : vector<8x32xf32>
    %94 = arith.addf %79, %93 : vector<8x32xf32>
    %95 = vector.extract_strided_slice %75 {offsets = [0, 32], sizes = [8, 32], strides = [1, 1]} : vector<8x128xf32> to vector<8x32xf32>
    %96 = vector.broadcast %76 : vector<1x32xf32> to vector<8x32xf32>
    %97 = arith.mulf %95, %96 : vector<8x32xf32>
    %cst_32 = arith.constant dense<0.000000e+00> : vector<8xf32>
    %98 = vector.multi_reduction <add>, %97, %cst_32 [1] : vector<8x32xf32> to vector<8xf32>
    %99 = vector.shape_cast %98 : vector<8xf32> to vector<8x1xf32>
    %100 = vector.broadcast %78 : f32 to vector<8x1xf32>
    %101 = arith.addf %99, %100 : vector<8x1xf32>
    %102 = arith.negf %101 : vector<8x1xf32>
    %103 = math.exp %102 : vector<8x1xf32>
    %cst_33 = arith.constant 1.000000e+00 : f32
    %104 = vector.broadcast %cst_33 : f32 to vector<8x1xf32>
    %105 = arith.addf %104, %103 : vector<8x1xf32>
    %106 = arith.divf %104, %105 : vector<8x1xf32>
    %107 = vector.broadcast %106 : vector<8x1xf32> to vector<8x32xf32>
    %108 = arith.mulf %107, %95 : vector<8x32xf32>
    %109 = arith.addf %94, %108 : vector<8x32xf32>
    %110 = vector.extract_strided_slice %75 {offsets = [0, 64], sizes = [8, 32], strides = [1, 1]} : vector<8x128xf32> to vector<8x32xf32>
    %111 = vector.broadcast %76 : vector<1x32xf32> to vector<8x32xf32>
    %112 = arith.mulf %110, %111 : vector<8x32xf32>
    %cst_34 = arith.constant dense<0.000000e+00> : vector<8xf32>
    %113 = vector.multi_reduction <add>, %112, %cst_34 [1] : vector<8x32xf32> to vector<8xf32>
    %114 = vector.shape_cast %113 : vector<8xf32> to vector<8x1xf32>
    %115 = vector.broadcast %78 : f32 to vector<8x1xf32>
    %116 = arith.addf %114, %115 : vector<8x1xf32>
    %117 = arith.negf %116 : vector<8x1xf32>
    %118 = math.exp %117 : vector<8x1xf32>
    %cst_35 = arith.constant 1.000000e+00 : f32
    %119 = vector.broadcast %cst_35 : f32 to vector<8x1xf32>
    %120 = arith.addf %119, %118 : vector<8x1xf32>
    %121 = arith.divf %119, %120 : vector<8x1xf32>
    %122 = vector.broadcast %121 : vector<8x1xf32> to vector<8x32xf32>
    %123 = arith.mulf %122, %110 : vector<8x32xf32>
    %124 = arith.addf %109, %123 : vector<8x32xf32>
    %125 = vector.extract_strided_slice %75 {offsets = [0, 96], sizes = [8, 32], strides = [1, 1]} : vector<8x128xf32> to vector<8x32xf32>
    %126 = vector.broadcast %76 : vector<1x32xf32> to vector<8x32xf32>
    %127 = arith.mulf %125, %126 : vector<8x32xf32>
    %cst_36 = arith.constant dense<0.000000e+00> : vector<8xf32>
    %128 = vector.multi_reduction <add>, %127, %cst_36 [1] : vector<8x32xf32> to vector<8xf32>
    %129 = vector.shape_cast %128 : vector<8xf32> to vector<8x1xf32>
    %130 = vector.broadcast %78 : f32 to vector<8x1xf32>
    %131 = arith.addf %129, %130 : vector<8x1xf32>
    %132 = arith.negf %131 : vector<8x1xf32>
    %133 = math.exp %132 : vector<8x1xf32>
    %cst_37 = arith.constant 1.000000e+00 : f32
    %134 = vector.broadcast %cst_37 : f32 to vector<8x1xf32>
    %135 = arith.addf %134, %133 : vector<8x1xf32>
    %136 = arith.divf %134, %135 : vector<8x1xf32>
    %137 = vector.broadcast %136 : vector<8x1xf32> to vector<8x32xf32>
    %138 = arith.mulf %137, %125 : vector<8x32xf32>
    %139 = arith.addf %124, %138 : vector<8x32xf32>
    %140 = tpu.concatenate %69, %139 in 0 : vector<8x32xf32>, vector<8x32xf32> -> vector<16x32xf32>
    %c0_38 = arith.constant 0 : index
    %c0_39 = arith.constant 0 : index
    %141 = vector.load %arg10[%c0_38, %c0_39] : memref<16x16xf32, #tpu.memory_space<vmem>>, vector<16x16xf32>
    %c0_40 = arith.constant 0 : index
    %c0_41 = arith.constant 0 : index
    %142 = vector.load %arg11[%c0_40, %c0_41] : memref<32x32xf32, #tpu.memory_space<vmem>>, vector<32x32xf32>
    %cst_42 = arith.constant dense<0.000000e+00> : vector<16x32xf32>
    %143 = tpu.matmul %140, %142, %cst_42 {dimension_numbers = #tpu.dot_dimension_numbers<[1], [0], [0], [1], [0, 0, 1, 1], [], []>} : vector<16x32xf32>, vector<32x32xf32>, vector<16x32xf32> -> vector<16x32xf32>
    %c0_43 = arith.constant 0 : index
    %c0_44 = arith.constant 0 : index
    %144 = vector.load %arg13[%c0_43, %c0_44] : memref<1x32xf32, #tpu.memory_space<vmem>>, vector<1x32xf32>
    %145 = vector.broadcast %144 : vector<1x32xf32> to vector<16x32xf32>
    %146 = arith.mulf %143, %145 : vector<16x32xf32>
    %cst_45 = arith.constant dense<0.000000e+00> : vector<16xf32>
    %147 = vector.multi_reduction <add>, %146, %cst_45 [1] : vector<16x32xf32> to vector<16xf32>
    %148 = vector.shape_cast %147 : vector<16xf32> to vector<16x1xf32>
    %149 = vector.shape_cast %143 : vector<16x32xf32> to vector<1x16x32xf32>
    %c0_46 = arith.constant 0 : index
    %c0_47 = arith.constant 0 : index
    %150 = vector.load %arg12[%c0_46, %c0_47] : memref<1x32xf32, #tpu.memory_space<vmem>>, vector<1x32xf32>
    %151 = vector.shape_cast %150 : vector<1x32xf32> to vector<1x1x32xf32>
    %152 = vector.broadcast %151 : vector<1x1x32xf32> to vector<1x16x32xf32>
    %153 = arith.mulf %149, %152 : vector<1x16x32xf32>
    %cst_48 = arith.constant dense<0.000000e+00> : vector<1x16xf32>
    %154 = vector.multi_reduction <add>, %153, %cst_48 [2] : vector<1x16x32xf32> to vector<1x16xf32>
    %155 = vector.broadcast %148 : vector<16x1xf32> to vector<16x16xf32>
    %156 = vector.broadcast %154 : vector<1x16xf32> to vector<16x16xf32>
    %157 = arith.addf %155, %156 : vector<16x16xf32>
    %cst_49 = arith.constant 0.000000e+00 : f32
    %158 = vector.broadcast %cst_49 : f32 to vector<16x16xf32>
    %159 = arith.cmpf ogt, %157, %158 : vector<16x16xf32>
    %cst_50 = arith.constant 2.000000e-01 : f32
    %160 = vector.broadcast %cst_50 : f32 to vector<16x16xf32>
    %161 = arith.mulf %160, %157 : vector<16x16xf32>
    %162 = arith.select %159, %157, %161 : vector<16x16xi1>, vector<16x16xf32>
    %163 = arith.addf %162, %141 : vector<16x16xf32>
    %cst_51 = arith.constant dense<0xFF800000> : vector<16xf32>
    %164 = vector.multi_reduction <maximumf>, %163, %cst_51 [1] : vector<16x16xf32> to vector<16xf32>
    %165 = vector.shape_cast %164 : vector<16xf32> to vector<16x1xf32>
    %166 = vector.broadcast %165 : vector<16x1xf32> to vector<16x16xf32>
    %167 = arith.subf %163, %166 : vector<16x16xf32>
    %168 = math.exp %167 : vector<16x16xf32>
    %cst_52 = arith.constant dense<0.000000e+00> : vector<16xf32>
    %169 = vector.multi_reduction <add>, %168, %cst_52 [1] : vector<16x16xf32> to vector<16xf32>
    %170 = vector.shape_cast %169 : vector<16xf32> to vector<16x1xf32>
    %171 = tpu.reciprocal %170 {approx = true} : vector<16x1xf32> -> vector<16x1xf32>
    %172 = vector.broadcast %171 : vector<16x1xf32> to vector<16x16xf32>
    %173 = arith.mulf %168, %172 : vector<16x16xf32>
    %cst_53 = arith.constant dense<0.000000e+00> : vector<16x32xf32>
    %174 = tpu.matmul %173, %143, %cst_53 {dimension_numbers = #tpu.dot_dimension_numbers<[1], [0], [0], [1], [0, 0, 1, 1], [], []>} : vector<16x16xf32>, vector<16x32xf32>, vector<16x32xf32> -> vector<16x32xf32>
    %c0_54 = arith.constant 0 : index
    %c0_55 = arith.constant 0 : index
    %175 = vector.load %arg14[%c0_54, %c0_55] : memref<1x32xf32, #tpu.memory_space<vmem>>, vector<1x32xf32>
    %176 = vector.broadcast %175 : vector<1x32xf32> to vector<16x32xf32>
    %177 = arith.addf %174, %176 : vector<16x32xf32>
    %cst_56 = arith.constant dense<0.000000e+00> : vector<32xf32>
    %178 = vector.multi_reduction <add>, %177, %cst_56 [0] : vector<16x32xf32> to vector<32xf32>
    %179 = vector.shape_cast %178 : vector<32xf32> to vector<1x32xf32>
    %cst_57 = arith.constant 1.600000e+01 : f32
    %180 = vector.broadcast %cst_57 : f32 to vector<1x32xf32>
    %181 = arith.divf %179, %180 : vector<1x32xf32>
    %182 = vector.broadcast %181 : vector<1x32xf32> to vector<16x32xf32>
    %183 = arith.subf %177, %182 : vector<16x32xf32>
    %184 = arith.mulf %183, %183 : vector<16x32xf32>
    %cst_58 = arith.constant dense<0.000000e+00> : vector<32xf32>
    %185 = vector.multi_reduction <add>, %184, %cst_58 [0] : vector<16x32xf32> to vector<32xf32>
    %186 = vector.shape_cast %185 : vector<32xf32> to vector<1x32xf32>
    %cst_59 = arith.constant 1.600000e+01 : f32
    %187 = vector.broadcast %cst_59 : f32 to vector<1x32xf32>
    %188 = arith.divf %186, %187 : vector<1x32xf32>
    %189 = vector.broadcast %181 : vector<1x32xf32> to vector<16x32xf32>
    %190 = arith.subf %177, %189 : vector<16x32xf32>
    %cst_60 = arith.constant 9.99999974E-6 : f32
    %191 = vector.broadcast %cst_60 : f32 to vector<1x32xf32>
    %192 = arith.addf %188, %191 : vector<1x32xf32>
    %193 = math.rsqrt %192 : vector<1x32xf32>
    %194 = vector.broadcast %193 : vector<1x32xf32> to vector<16x32xf32>
    %195 = arith.mulf %190, %194 : vector<16x32xf32>
    %c0_61 = arith.constant 0 : index
    %c0_62 = arith.constant 0 : index
    %196 = vector.load %arg15[%c0_61, %c0_62] : memref<1x32xf32, #tpu.memory_space<vmem>>, vector<1x32xf32>
    %197 = vector.broadcast %196 : vector<1x32xf32> to vector<16x32xf32>
    %198 = arith.mulf %195, %197 : vector<16x32xf32>
    %c0_63 = arith.constant 0 : index
    %c0_64 = arith.constant 0 : index
    %199 = vector.load %arg16[%c0_63, %c0_64] : memref<1x32xf32, #tpu.memory_space<vmem>>, vector<1x32xf32>
    %200 = vector.broadcast %199 : vector<1x32xf32> to vector<16x32xf32>
    %201 = arith.addf %198, %200 : vector<16x32xf32>
    %cst_65 = arith.constant 0.000000e+00 : f32
    %202 = vector.broadcast %cst_65 : f32 to vector<16x32xf32>
    %203 = arith.maximumf %201, %202 : vector<16x32xf32>
    %c0_66 = arith.constant 0 : index
    %c0_67 = arith.constant 0 : index
    %204 = vector.load %arg17[%c0_66, %c0_67] : memref<32x32xf32, #tpu.memory_space<vmem>>, vector<32x32xf32>
    %cst_68 = arith.constant dense<0.000000e+00> : vector<16x32xf32>
    %205 = tpu.matmul %203, %204, %cst_68 {dimension_numbers = #tpu.dot_dimension_numbers<[1], [0], [0], [1], [0, 0, 1, 1], [], []>} : vector<16x32xf32>, vector<32x32xf32>, vector<16x32xf32> -> vector<16x32xf32>
    %c0_69 = arith.constant 0 : index
    %c0_70 = arith.constant 0 : index
    %206 = vector.load %arg19[%c0_69, %c0_70] : memref<1x32xf32, #tpu.memory_space<vmem>>, vector<1x32xf32>
    %207 = vector.broadcast %206 : vector<1x32xf32> to vector<16x32xf32>
    %208 = arith.mulf %205, %207 : vector<16x32xf32>
    %cst_71 = arith.constant dense<0.000000e+00> : vector<16xf32>
    %209 = vector.multi_reduction <add>, %208, %cst_71 [1] : vector<16x32xf32> to vector<16xf32>
    %210 = vector.shape_cast %209 : vector<16xf32> to vector<16x1xf32>
    %211 = vector.shape_cast %205 : vector<16x32xf32> to vector<1x16x32xf32>
    %c0_72 = arith.constant 0 : index
    %c0_73 = arith.constant 0 : index
    %212 = vector.load %arg18[%c0_72, %c0_73] : memref<1x32xf32, #tpu.memory_space<vmem>>, vector<1x32xf32>
    %213 = vector.shape_cast %212 : vector<1x32xf32> to vector<1x1x32xf32>
    %214 = vector.broadcast %213 : vector<1x1x32xf32> to vector<1x16x32xf32>
    %215 = arith.mulf %211, %214 : vector<1x16x32xf32>
    %cst_74 = arith.constant dense<0.000000e+00> : vector<1x16xf32>
    %216 = vector.multi_reduction <add>, %215, %cst_74 [2] : vector<1x16x32xf32> to vector<1x16xf32>
    %217 = vector.broadcast %210 : vector<16x1xf32> to vector<16x16xf32>
    %218 = vector.broadcast %216 : vector<1x16xf32> to vector<16x16xf32>
    %219 = arith.addf %217, %218 : vector<16x16xf32>
    %cst_75 = arith.constant 0.000000e+00 : f32
    %220 = vector.broadcast %cst_75 : f32 to vector<16x16xf32>
    %221 = arith.cmpf ogt, %219, %220 : vector<16x16xf32>
    %cst_76 = arith.constant 2.000000e-01 : f32
    %222 = vector.broadcast %cst_76 : f32 to vector<16x16xf32>
    %223 = arith.mulf %222, %219 : vector<16x16xf32>
    %224 = arith.select %221, %219, %223 : vector<16x16xi1>, vector<16x16xf32>
    %225 = arith.addf %224, %141 : vector<16x16xf32>
    %cst_77 = arith.constant dense<0xFF800000> : vector<16xf32>
    %226 = vector.multi_reduction <maximumf>, %225, %cst_77 [1] : vector<16x16xf32> to vector<16xf32>
    %227 = vector.shape_cast %226 : vector<16xf32> to vector<16x1xf32>
    %228 = vector.broadcast %227 : vector<16x1xf32> to vector<16x16xf32>
    %229 = arith.subf %225, %228 : vector<16x16xf32>
    %230 = math.exp %229 : vector<16x16xf32>
    %cst_78 = arith.constant dense<0.000000e+00> : vector<16xf32>
    %231 = vector.multi_reduction <add>, %230, %cst_78 [1] : vector<16x16xf32> to vector<16xf32>
    %232 = vector.shape_cast %231 : vector<16xf32> to vector<16x1xf32>
    %233 = tpu.reciprocal %232 {approx = true} : vector<16x1xf32> -> vector<16x1xf32>
    %234 = vector.broadcast %233 : vector<16x1xf32> to vector<16x16xf32>
    %235 = arith.mulf %230, %234 : vector<16x16xf32>
    %cst_79 = arith.constant dense<0.000000e+00> : vector<16x32xf32>
    %236 = tpu.matmul %235, %205, %cst_79 {dimension_numbers = #tpu.dot_dimension_numbers<[1], [0], [0], [1], [0, 0, 1, 1], [], []>} : vector<16x16xf32>, vector<16x32xf32>, vector<16x32xf32> -> vector<16x32xf32>
    %c0_80 = arith.constant 0 : index
    %c0_81 = arith.constant 0 : index
    %237 = vector.load %arg20[%c0_80, %c0_81] : memref<1x32xf32, #tpu.memory_space<vmem>>, vector<1x32xf32>
    %238 = vector.broadcast %237 : vector<1x32xf32> to vector<16x32xf32>
    %239 = arith.addf %236, %238 : vector<16x32xf32>
    %cst_82 = arith.constant dense<0.000000e+00> : vector<32xf32>
    %240 = vector.multi_reduction <add>, %239, %cst_82 [0] : vector<16x32xf32> to vector<32xf32>
    %241 = vector.shape_cast %240 : vector<32xf32> to vector<1x32xf32>
    %cst_83 = arith.constant 1.600000e+01 : f32
    %242 = vector.broadcast %cst_83 : f32 to vector<1x32xf32>
    %243 = arith.divf %241, %242 : vector<1x32xf32>
    %244 = vector.broadcast %243 : vector<1x32xf32> to vector<16x32xf32>
    %245 = arith.subf %239, %244 : vector<16x32xf32>
    %246 = arith.mulf %245, %245 : vector<16x32xf32>
    %cst_84 = arith.constant dense<0.000000e+00> : vector<32xf32>
    %247 = vector.multi_reduction <add>, %246, %cst_84 [0] : vector<16x32xf32> to vector<32xf32>
    %248 = vector.shape_cast %247 : vector<32xf32> to vector<1x32xf32>
    %cst_85 = arith.constant 1.600000e+01 : f32
    %249 = vector.broadcast %cst_85 : f32 to vector<1x32xf32>
    %250 = arith.divf %248, %249 : vector<1x32xf32>
    %251 = vector.broadcast %243 : vector<1x32xf32> to vector<16x32xf32>
    %252 = arith.subf %239, %251 : vector<16x32xf32>
    %cst_86 = arith.constant 9.99999974E-6 : f32
    %253 = vector.broadcast %cst_86 : f32 to vector<1x32xf32>
    %254 = arith.addf %250, %253 : vector<1x32xf32>
    %255 = math.rsqrt %254 : vector<1x32xf32>
    %256 = vector.broadcast %255 : vector<1x32xf32> to vector<16x32xf32>
    %257 = arith.mulf %252, %256 : vector<16x32xf32>
    %c0_87 = arith.constant 0 : index
    %c0_88 = arith.constant 0 : index
    %258 = vector.load %arg21[%c0_87, %c0_88] : memref<1x32xf32, #tpu.memory_space<vmem>>, vector<1x32xf32>
    %259 = vector.broadcast %258 : vector<1x32xf32> to vector<16x32xf32>
    %260 = arith.mulf %257, %259 : vector<16x32xf32>
    %c0_89 = arith.constant 0 : index
    %c0_90 = arith.constant 0 : index
    %261 = vector.load %arg22[%c0_89, %c0_90] : memref<1x32xf32, #tpu.memory_space<vmem>>, vector<1x32xf32>
    %262 = vector.broadcast %261 : vector<1x32xf32> to vector<16x32xf32>
    %263 = arith.addf %260, %262 : vector<16x32xf32>
    %cst_91 = arith.constant 0.000000e+00 : f32
    %264 = vector.broadcast %cst_91 : f32 to vector<16x32xf32>
    %265 = arith.maximumf %263, %264 : vector<16x32xf32>
    %c0_92 = arith.constant 0 : index
    %c0_93 = arith.constant 0 : index
    %266 = vector.load %arg23[%c0_92, %c0_93] : memref<32x32xf32, #tpu.memory_space<vmem>>, vector<32x32xf32>
    %cst_94 = arith.constant dense<0.000000e+00> : vector<16x32xf32>
    %267 = tpu.matmul %265, %266, %cst_94 {dimension_numbers = #tpu.dot_dimension_numbers<[1], [0], [0], [1], [0, 0, 1, 1], [], []>} : vector<16x32xf32>, vector<32x32xf32>, vector<16x32xf32> -> vector<16x32xf32>
    %c0_95 = arith.constant 0 : index
    %c0_96 = arith.constant 0 : index
    %268 = vector.load %arg25[%c0_95, %c0_96] : memref<1x32xf32, #tpu.memory_space<vmem>>, vector<1x32xf32>
    %269 = vector.broadcast %268 : vector<1x32xf32> to vector<16x32xf32>
    %270 = arith.mulf %267, %269 : vector<16x32xf32>
    %cst_97 = arith.constant dense<0.000000e+00> : vector<16xf32>
    %271 = vector.multi_reduction <add>, %270, %cst_97 [1] : vector<16x32xf32> to vector<16xf32>
    %272 = vector.shape_cast %271 : vector<16xf32> to vector<16x1xf32>
    %273 = vector.shape_cast %267 : vector<16x32xf32> to vector<1x16x32xf32>
    %c0_98 = arith.constant 0 : index
    %c0_99 = arith.constant 0 : index
    %274 = vector.load %arg24[%c0_98, %c0_99] : memref<1x32xf32, #tpu.memory_space<vmem>>, vector<1x32xf32>
    %275 = vector.shape_cast %274 : vector<1x32xf32> to vector<1x1x32xf32>
    %276 = vector.broadcast %275 : vector<1x1x32xf32> to vector<1x16x32xf32>
    %277 = arith.mulf %273, %276 : vector<1x16x32xf32>
    %cst_100 = arith.constant dense<0.000000e+00> : vector<1x16xf32>
    %278 = vector.multi_reduction <add>, %277, %cst_100 [2] : vector<1x16x32xf32> to vector<1x16xf32>
    %279 = vector.broadcast %272 : vector<16x1xf32> to vector<16x16xf32>
    %280 = vector.broadcast %278 : vector<1x16xf32> to vector<16x16xf32>
    %281 = arith.addf %279, %280 : vector<16x16xf32>
    %cst_101 = arith.constant 0.000000e+00 : f32
    %282 = vector.broadcast %cst_101 : f32 to vector<16x16xf32>
    %283 = arith.cmpf ogt, %281, %282 : vector<16x16xf32>
    %cst_102 = arith.constant 2.000000e-01 : f32
    %284 = vector.broadcast %cst_102 : f32 to vector<16x16xf32>
    %285 = arith.mulf %284, %281 : vector<16x16xf32>
    %286 = arith.select %283, %281, %285 : vector<16x16xi1>, vector<16x16xf32>
    %287 = arith.addf %286, %141 : vector<16x16xf32>
    %cst_103 = arith.constant dense<0xFF800000> : vector<16xf32>
    %288 = vector.multi_reduction <maximumf>, %287, %cst_103 [1] : vector<16x16xf32> to vector<16xf32>
    %289 = vector.shape_cast %288 : vector<16xf32> to vector<16x1xf32>
    %290 = vector.broadcast %289 : vector<16x1xf32> to vector<16x16xf32>
    %291 = arith.subf %287, %290 : vector<16x16xf32>
    %292 = math.exp %291 : vector<16x16xf32>
    %cst_104 = arith.constant dense<0.000000e+00> : vector<16xf32>
    %293 = vector.multi_reduction <add>, %292, %cst_104 [1] : vector<16x16xf32> to vector<16xf32>
    %294 = vector.shape_cast %293 : vector<16xf32> to vector<16x1xf32>
    %295 = tpu.reciprocal %294 {approx = true} : vector<16x1xf32> -> vector<16x1xf32>
    %296 = vector.broadcast %295 : vector<16x1xf32> to vector<16x16xf32>
    %297 = arith.mulf %292, %296 : vector<16x16xf32>
    %cst_105 = arith.constant dense<0.000000e+00> : vector<16x32xf32>
    %298 = tpu.matmul %297, %267, %cst_105 {dimension_numbers = #tpu.dot_dimension_numbers<[1], [0], [0], [1], [0, 0, 1, 1], [], []>} : vector<16x16xf32>, vector<16x32xf32>, vector<16x32xf32> -> vector<16x32xf32>
    %c0_106 = arith.constant 0 : index
    %c0_107 = arith.constant 0 : index
    %299 = vector.load %arg26[%c0_106, %c0_107] : memref<1x32xf32, #tpu.memory_space<vmem>>, vector<1x32xf32>
    %300 = vector.broadcast %299 : vector<1x32xf32> to vector<16x32xf32>
    %301 = arith.addf %298, %300 : vector<16x32xf32>
    %c0_108 = arith.constant 0 : index
    %c0_109 = arith.constant 0 : index
    %302 = vector.load %arg27[%c0_108, %c0_109] : memref<1x32xf32, #tpu.memory_space<vmem>>, vector<1x32xf32>
    %c0_110 = arith.constant 0 : index
    %c0_111 = arith.constant 0 : index
    %303 = vector.load %arg28[%c0_110, %c0_111] : memref<1x1xf32, #tpu.memory_space<vmem>>, vector<1x1xf32>
    %304 = vector.extract %303[0, 0] : f32 from vector<1x1xf32>
    %cst_112 = arith.constant 0.000000e+00 : f32
    %305 = vector.broadcast %cst_112 : f32 to vector<16x32xf32>
    %306 = vector.broadcast %302 : vector<1x32xf32> to vector<16x32xf32>
    %307 = arith.mulf %140, %306 : vector<16x32xf32>
    %cst_113 = arith.constant dense<0.000000e+00> : vector<16xf32>
    %308 = vector.multi_reduction <add>, %307, %cst_113 [1] : vector<16x32xf32> to vector<16xf32>
    %309 = vector.shape_cast %308 : vector<16xf32> to vector<16x1xf32>
    %310 = vector.broadcast %304 : f32 to vector<16x1xf32>
    %311 = arith.addf %309, %310 : vector<16x1xf32>
    %312 = arith.negf %311 : vector<16x1xf32>
    %313 = math.exp %312 : vector<16x1xf32>
    %cst_114 = arith.constant 1.000000e+00 : f32
    %314 = vector.broadcast %cst_114 : f32 to vector<16x1xf32>
    %315 = arith.addf %314, %313 : vector<16x1xf32>
    %316 = arith.divf %314, %315 : vector<16x1xf32>
    %317 = vector.broadcast %316 : vector<16x1xf32> to vector<16x32xf32>
    %318 = arith.mulf %317, %140 : vector<16x32xf32>
    %319 = arith.addf %305, %318 : vector<16x32xf32>
    %320 = vector.broadcast %302 : vector<1x32xf32> to vector<16x32xf32>
    %321 = arith.mulf %177, %320 : vector<16x32xf32>
    %cst_115 = arith.constant dense<0.000000e+00> : vector<16xf32>
    %322 = vector.multi_reduction <add>, %321, %cst_115 [1] : vector<16x32xf32> to vector<16xf32>
    %323 = vector.shape_cast %322 : vector<16xf32> to vector<16x1xf32>
    %324 = vector.broadcast %304 : f32 to vector<16x1xf32>
    %325 = arith.addf %323, %324 : vector<16x1xf32>
    %326 = arith.negf %325 : vector<16x1xf32>
    %327 = math.exp %326 : vector<16x1xf32>
    %cst_116 = arith.constant 1.000000e+00 : f32
    %328 = vector.broadcast %cst_116 : f32 to vector<16x1xf32>
    %329 = arith.addf %328, %327 : vector<16x1xf32>
    %330 = arith.divf %328, %329 : vector<16x1xf32>
    %331 = vector.broadcast %330 : vector<16x1xf32> to vector<16x32xf32>
    %332 = arith.mulf %331, %177 : vector<16x32xf32>
    %333 = arith.addf %319, %332 : vector<16x32xf32>
    %334 = vector.broadcast %302 : vector<1x32xf32> to vector<16x32xf32>
    %335 = arith.mulf %239, %334 : vector<16x32xf32>
    %cst_117 = arith.constant dense<0.000000e+00> : vector<16xf32>
    %336 = vector.multi_reduction <add>, %335, %cst_117 [1] : vector<16x32xf32> to vector<16xf32>
    %337 = vector.shape_cast %336 : vector<16xf32> to vector<16x1xf32>
    %338 = vector.broadcast %304 : f32 to vector<16x1xf32>
    %339 = arith.addf %337, %338 : vector<16x1xf32>
    %340 = arith.negf %339 : vector<16x1xf32>
    %341 = math.exp %340 : vector<16x1xf32>
    %cst_118 = arith.constant 1.000000e+00 : f32
    %342 = vector.broadcast %cst_118 : f32 to vector<16x1xf32>
    %343 = arith.addf %342, %341 : vector<16x1xf32>
    %344 = arith.divf %342, %343 : vector<16x1xf32>
    %345 = vector.broadcast %344 : vector<16x1xf32> to vector<16x32xf32>
    %346 = arith.mulf %345, %239 : vector<16x32xf32>
    %347 = arith.addf %333, %346 : vector<16x32xf32>
    %348 = vector.broadcast %302 : vector<1x32xf32> to vector<16x32xf32>
    %349 = arith.mulf %301, %348 : vector<16x32xf32>
    %cst_119 = arith.constant dense<0.000000e+00> : vector<16xf32>
    %350 = vector.multi_reduction <add>, %349, %cst_119 [1] : vector<16x32xf32> to vector<16xf32>
    %351 = vector.shape_cast %350 : vector<16xf32> to vector<16x1xf32>
    %352 = vector.broadcast %304 : f32 to vector<16x1xf32>
    %353 = arith.addf %351, %352 : vector<16x1xf32>
    %354 = arith.negf %353 : vector<16x1xf32>
    %355 = math.exp %354 : vector<16x1xf32>
    %cst_120 = arith.constant 1.000000e+00 : f32
    %356 = vector.broadcast %cst_120 : f32 to vector<16x1xf32>
    %357 = arith.addf %356, %355 : vector<16x1xf32>
    %358 = arith.divf %356, %357 : vector<16x1xf32>
    %359 = vector.broadcast %358 : vector<16x1xf32> to vector<16x32xf32>
    %360 = arith.mulf %359, %301 : vector<16x32xf32>
    %361 = arith.addf %347, %360 : vector<16x32xf32>
    %362 = tpu.iota {dimensions = array<i32: 1>} : vector<6x16xi32>
    %c0_121 = arith.constant 0 : index
    %c0_122 = arith.constant 0 : index
    %363 = vector.load %arg29[%c0_121, %c0_122] : memref<6x1xi32, #tpu.memory_space<vmem>>, vector<6x1xi32>
    %364 = vector.broadcast %363 : vector<6x1xi32> to vector<6x16xi32>
    %365 = arith.cmpi eq, %362, %364 : vector<6x16xi32>
    %366 = arith.extui %365 : vector<6x16xi1> to vector<6x16xi32>
    %367 = arith.sitofp %366 : vector<6x16xi32> to vector<6x16xf32>
    %c0_123 = arith.constant 0 : index
    %c0_124 = arith.constant 0 : index
    %368 = vector.load %arg30[%c0_123, %c0_124] : memref<6x1xi32, #tpu.memory_space<vmem>>, vector<6x1xi32>
    %369 = vector.broadcast %368 : vector<6x1xi32> to vector<6x16xi32>
    %370 = arith.cmpi eq, %362, %369 : vector<6x16xi32>
    %371 = arith.extui %370 : vector<6x16xi1> to vector<6x16xi32>
    %372 = arith.sitofp %371 : vector<6x16xi32> to vector<6x16xf32>
    %cst_125 = arith.constant dense<0.000000e+00> : vector<6x32xf32>
    %373 = tpu.matmul %367, %361, %cst_125 {dimension_numbers = #tpu.dot_dimension_numbers<[1], [0], [0], [1], [0, 0, 1, 1], [], []>} : vector<6x16xf32>, vector<16x32xf32>, vector<6x32xf32> -> vector<6x32xf32>
    %cst_126 = arith.constant dense<0.000000e+00> : vector<6x32xf32>
    %374 = tpu.matmul %372, %361, %cst_126 {dimension_numbers = #tpu.dot_dimension_numbers<[1], [0], [0], [1], [0, 0, 1, 1], [], []>} : vector<6x16xf32>, vector<16x32xf32>, vector<6x32xf32> -> vector<6x32xf32>
    %375 = tpu.concatenate %373, %374 in 1 : vector<6x32xf32>, vector<6x32xf32> -> vector<6x64xf32>
    %cst_127 = arith.constant dense<0.000000e+00> : vector<64xf32>
    %376 = vector.multi_reduction <add>, %375, %cst_127 [0] : vector<6x64xf32> to vector<64xf32>
    %377 = vector.shape_cast %376 : vector<64xf32> to vector<1x64xf32>
    %cst_128 = arith.constant 6.000000e+00 : f32
    %378 = vector.broadcast %cst_128 : f32 to vector<1x64xf32>
    %379 = arith.divf %377, %378 : vector<1x64xf32>
    %380 = vector.broadcast %379 : vector<1x64xf32> to vector<6x64xf32>
    %381 = arith.subf %375, %380 : vector<6x64xf32>
    %382 = arith.mulf %381, %381 : vector<6x64xf32>
    %cst_129 = arith.constant dense<0.000000e+00> : vector<64xf32>
    %383 = vector.multi_reduction <add>, %382, %cst_129 [0] : vector<6x64xf32> to vector<64xf32>
    %384 = vector.shape_cast %383 : vector<64xf32> to vector<1x64xf32>
    %cst_130 = arith.constant 6.000000e+00 : f32
    %385 = vector.broadcast %cst_130 : f32 to vector<1x64xf32>
    %386 = arith.divf %384, %385 : vector<1x64xf32>
    %387 = vector.broadcast %379 : vector<1x64xf32> to vector<6x64xf32>
    %388 = arith.subf %375, %387 : vector<6x64xf32>
    %cst_131 = arith.constant 9.99999974E-6 : f32
    %389 = vector.broadcast %cst_131 : f32 to vector<1x64xf32>
    %390 = arith.addf %386, %389 : vector<1x64xf32>
    %391 = math.rsqrt %390 : vector<1x64xf32>
    %392 = vector.broadcast %391 : vector<1x64xf32> to vector<6x64xf32>
    %393 = arith.mulf %388, %392 : vector<6x64xf32>
    %c0_132 = arith.constant 0 : index
    %c0_133 = arith.constant 0 : index
    %394 = vector.load %arg31[%c0_132, %c0_133] : memref<1x64xf32, #tpu.memory_space<vmem>>, vector<1x64xf32>
    %395 = vector.broadcast %394 : vector<1x64xf32> to vector<6x64xf32>
    %396 = arith.mulf %393, %395 : vector<6x64xf32>
    %c0_134 = arith.constant 0 : index
    %c0_135 = arith.constant 0 : index
    %397 = vector.load %arg32[%c0_134, %c0_135] : memref<1x64xf32, #tpu.memory_space<vmem>>, vector<1x64xf32>
    %398 = vector.broadcast %397 : vector<1x64xf32> to vector<6x64xf32>
    %399 = arith.addf %396, %398 : vector<6x64xf32>
    %c0_136 = arith.constant 0 : index
    %c0_137 = arith.constant 0 : index
    %400 = vector.load %arg33[%c0_136, %c0_137] : memref<64x32xf32, #tpu.memory_space<vmem>>, vector<64x32xf32>
    %cst_138 = arith.constant dense<0.000000e+00> : vector<6x32xf32>
    %401 = tpu.matmul %399, %400, %cst_138 {dimension_numbers = #tpu.dot_dimension_numbers<[1], [0], [0], [1], [0, 0, 1, 1], [], []>} : vector<6x64xf32>, vector<64x32xf32>, vector<6x32xf32> -> vector<6x32xf32>
    %c0_139 = arith.constant 0 : index
    %c0_140 = arith.constant 0 : index
    %402 = vector.load %arg34[%c0_139, %c0_140] : memref<1x32xf32, #tpu.memory_space<vmem>>, vector<1x32xf32>
    %403 = vector.broadcast %402 : vector<1x32xf32> to vector<6x32xf32>
    %404 = arith.addf %401, %403 : vector<6x32xf32>
    %cst_141 = arith.constant 0.000000e+00 : f32
    %405 = vector.broadcast %cst_141 : f32 to vector<6x32xf32>
    %406 = arith.cmpf ogt, %404, %405 : vector<6x32xf32>
    %cst_142 = arith.constant 0.00999999977 : f32
    %407 = vector.broadcast %cst_142 : f32 to vector<6x32xf32>
    %408 = arith.mulf %407, %404 : vector<6x32xf32>
    %409 = arith.select %406, %404, %408 : vector<6x32xi1>, vector<6x32xf32>
    %cst_143 = arith.constant dense<0.000000e+00> : vector<32xf32>
    %410 = vector.multi_reduction <add>, %409, %cst_143 [0] : vector<6x32xf32> to vector<32xf32>
    %411 = vector.shape_cast %410 : vector<32xf32> to vector<1x32xf32>
    %cst_144 = arith.constant 6.000000e+00 : f32
    %412 = vector.broadcast %cst_144 : f32 to vector<1x32xf32>
    %413 = arith.divf %411, %412 : vector<1x32xf32>
    %414 = vector.broadcast %413 : vector<1x32xf32> to vector<6x32xf32>
    %415 = arith.subf %409, %414 : vector<6x32xf32>
    %416 = arith.mulf %415, %415 : vector<6x32xf32>
    %cst_145 = arith.constant dense<0.000000e+00> : vector<32xf32>
    %417 = vector.multi_reduction <add>, %416, %cst_145 [0] : vector<6x32xf32> to vector<32xf32>
    %418 = vector.shape_cast %417 : vector<32xf32> to vector<1x32xf32>
    %cst_146 = arith.constant 6.000000e+00 : f32
    %419 = vector.broadcast %cst_146 : f32 to vector<1x32xf32>
    %420 = arith.divf %418, %419 : vector<1x32xf32>
    %421 = vector.broadcast %413 : vector<1x32xf32> to vector<6x32xf32>
    %422 = arith.subf %409, %421 : vector<6x32xf32>
    %cst_147 = arith.constant 9.99999974E-6 : f32
    %423 = vector.broadcast %cst_147 : f32 to vector<1x32xf32>
    %424 = arith.addf %420, %423 : vector<1x32xf32>
    %425 = math.rsqrt %424 : vector<1x32xf32>
    %426 = vector.broadcast %425 : vector<1x32xf32> to vector<6x32xf32>
    %427 = arith.mulf %422, %426 : vector<6x32xf32>
    %c0_148 = arith.constant 0 : index
    %c0_149 = arith.constant 0 : index
    %428 = vector.load %arg35[%c0_148, %c0_149] : memref<1x32xf32, #tpu.memory_space<vmem>>, vector<1x32xf32>
    %429 = vector.broadcast %428 : vector<1x32xf32> to vector<6x32xf32>
    %430 = arith.mulf %427, %429 : vector<6x32xf32>
    %c0_150 = arith.constant 0 : index
    %c0_151 = arith.constant 0 : index
    %431 = vector.load %arg36[%c0_150, %c0_151] : memref<1x32xf32, #tpu.memory_space<vmem>>, vector<1x32xf32>
    %432 = vector.broadcast %431 : vector<1x32xf32> to vector<6x32xf32>
    %433 = arith.addf %430, %432 : vector<6x32xf32>
    %c0_152 = arith.constant 0 : index
    %c0_153 = arith.constant 0 : index
    %434 = vector.load %arg37[%c0_152, %c0_153] : memref<32x1xf32, #tpu.memory_space<vmem>>, vector<32x1xf32>
    %cst_154 = arith.constant dense<0.000000e+00> : vector<6x1xf32>
    %435 = tpu.matmul %433, %434, %cst_154 {dimension_numbers = #tpu.dot_dimension_numbers<[1], [0], [0], [1], [0, 0, 1, 1], [], []>} : vector<6x32xf32>, vector<32x1xf32>, vector<6x1xf32> -> vector<6x1xf32>
    %c0_155 = arith.constant 0 : index
    %c0_156 = arith.constant 0 : index
    %436 = vector.load %arg38[%c0_155, %c0_156] : memref<1x1xf32, #tpu.memory_space<vmem>>, vector<1x1xf32>
    %437 = vector.broadcast %436 : vector<1x1xf32> to vector<6x1xf32>
    %438 = arith.addf %435, %437 : vector<6x1xf32>
    %439 = arith.negf %438 : vector<6x1xf32>
    %440 = math.exp %439 : vector<6x1xf32>
    %cst_157 = arith.constant 1.000000e+00 : f32
    %441 = vector.broadcast %cst_157 : f32 to vector<6x1xf32>
    %442 = arith.addf %441, %440 : vector<6x1xf32>
    %443 = arith.divf %441, %442 : vector<6x1xf32>
    %c0_158 = arith.constant 0 : index
    %c0_159 = arith.constant 0 : index
    %444 = vector.load %arg39[%c0_158, %c0_159] : memref<6x1xf32, #tpu.memory_space<vmem>>, vector<6x1xf32>
    tpu.vector_store %arg39[%c0_158, %c0_159], %443 {strides = array<i32>} : memref<6x1xf32, #tpu.memory_space<vmem>>, vector<6x1xf32>,
    return
  }
}

</mosaic_0001>

<bundles_post_ra>
// kernel: mgcat_forward.1
= control target key start
LH: loop header
LB: loop body
LE: loop exit
PB: predicated region body
PF: predicated region fallthrough
CT: control target
= control target key end

     0   :  { %s3021_s6 = smov 1   ;;  %s3022_s10 = smov 2   ;;  %s3636_s0 = inlined_call_operand.smem [shape: u32[40], index: -1, kind: input, shape index: {}] }
   0x1   :  { %s3092_s5 = sld [smem:[%s3636_s0]]   ;;  %s3023_s14 = smov 3  }
   0x2   :  { %s3097_s9 = sld [smem:[%s3636_s0 + %s3021_s6]]   ;;  %s3024_s18 = smov 4  }
   0x3   :  { %s3102_s13 = sld [smem:[%s3636_s0 + %s3022_s10]]   ;;  %s3025_s22 = smov 5  }
   0x4   :  { %s3107_s17 = sld [smem:[%s3636_s0 + %s3023_s14]]   ;;  %s3026_s26 = smov 6  }
   0x5   :  { %s3112_s21 = sld [smem:[%s3636_s0 + %s3024_s18]]   ;;  %s3027_s30 = smov 7  }
   0x6   :  { %s3117_s25 = sld [smem:[%s3636_s0 + %s3025_s22]]   ;;  %s3028_s4 = smov 8  }
   0x7   :  { %3643 = sst [smem:[#allocation36_spill]] %s3092_s5  ;;  %s3029_s10 = smov 10  }
   0x8   :  { %3644 = sst [smem:[#allocation37_spill]] %s3097_s9  ;;  %s3030_s15 = smov 11  }
   0x9   :  { %3645 = sst [smem:[#allocation38_spill]] %s3102_s13  ;;  %s3031_s20 = smov 12  }
   0xa   :  { %s3122_s29 = sld [smem:[%s3636_s0 + %s3026_s26]]   ;;  %s3032_s26 = smov 13  }
   0xb   :  { %3646 = sst [smem:[#allocation39_spill]] %s3112_s21  ;;  %s3033_s1 = smov 14  }
   0xc   :  { %3647 = sst [smem:[#allocation40_spill]] %s3117_s25  ;;  %s3034_s7 = smov 15  }
   0xd   :  { %s2140_s3 = sld [smem:[%s3636_s0 + %s3027_s30]]   ;;  %s3036_s22 = smov 17  }
   0xe   :  { %s3130_s8 = sld [smem:[%s3636_s0 + %s3028_s4]]   ;;  %s3038_s4 = smov 19  }
   0xf   :  { %s3135_s14 = sld [smem:[%s3636_s0 + %s3029_s10]]  }
  0x10   :  { %s3140_s19 = sld [smem:[%s3636_s0 + %s3030_s15]]   ;;  %s3035_s15 = smov 16  }
  0x11   :  { %s3145_s24 = sld [smem:[%s3636_s0 + %s3031_s20]]  }
  0x12   :  { %s3150_s30 = sld [smem:[%s3636_s0 + %s3032_s26]]  }
  0x13   :  { %s3155_s6 = sld [smem:[%s3636_s0 + %s3033_s1]]   ;;  %v84_v0 = vstv %s2140_s3  ;;  %s3037_s3 = smov 18  }
  0x14   :  { %3648 = sst [smem:[#allocation41_spill]] %s3130_s8  ;;  %85 = vst [vmem:[#allocation2] sm:$0x1] %v84_v0 }
  0x15   :  { %3649 = sst [smem:[#allocation42_spill]] %s3135_s14 }
  0x16   :  { %s3160_s12 = sld [smem:[%s3636_s0 + %s3034_s7]]   ;;  %s3058_s7 = smov 28  }
  0x17   :  { %s3165_s20 = sld [smem:[%s3636_s0 + %s3035_s15]]   ;;  %s3039_s15 = smov 20  }
  0x18   :  { %s3170_s27 = sld [smem:[%s3636_s0 + %s3036_s22]]   ;;  %s3040_s22 = smov 21  }
  0x19   :  { %s3175_s2 = sld [smem:[%s3636_s0 + %s3037_s3]]   ;;  %s3041_s3 = smov 22  }
  0x1a   :  { %s3180_s11 = sld [smem:[%s3636_s0 + %s3038_s4]]   ;;  %s3042_s4 = smov 23  }
  0x1b   :  { %s3200_s14 = sld [smem:[%s3636_s0 + %s3042_s4]]   ;;  %s3046_s4 = smov 27  }
  0x1c   :  { %3650 = sst [smem:[#allocation43_spill]] %s3160_s12 }
  0x1d   :  { %3651 = sst [smem:[#allocation44_spill]] %s3165_s20 }
  0x1e   :  { %3652 = sst [smem:[#allocation45_spill]] %s3170_s27 }
  0x1f   :  { %s3185_s20 = sld [smem:[%s3636_s0 + %s3039_s15]]   ;;  %s3043_s15 = smov 24  }
  0x20   :  { %s3190_s12 = sld [smem:[%s3636_s0 + %s3040_s22]]   ;;  %s3044_s22 = smov 25  }
  0x21   :  { %s3195_s27 = sld [smem:[%s3636_s0 + %s3041_s3]]   ;;  %s3045_s3 = smov 26  }
  0x22   :  { %s3205_s25 = sld [smem:[%s3636_s0 + %s3043_s15]]   ;;  %s3047_s15 = smov 29  }
  0x23   :  { %s3220_s9 = sld [smem:[%s3636_s0 + %s3046_s4]]   ;;  %s3050_s4 = smov 32  }
  0x24   :  { %s3225_s5 = sld [smem:[%s3636_s0 + %s3047_s15]]   ;;  %s3051_s15 = smov 33  }
  0x25   :  { %s3240_s13 = sld [smem:[%s3636_s0 + %s3050_s4]]   ;;  %s3054_s4 = smov 36  }
  0x26   :  { %3653 = sst [smem:[#allocation46_spill]] %s3190_s12 }
  0x27   :  { %3654 = sst [smem:[#allocation47_spill]] %s3195_s27 }
  0x28   :  { %s3210_s12 = sld [smem:[%s3636_s0 + %s3044_s22]]   ;;  %s3048_s22 = smov 30  }
  0x29   :  { %s3215_s27 = sld [smem:[%s3636_s0 + %s3045_s3]]   ;;  %s3049_s3 = smov 31  }
  0x2a   :  { %3655 = sst [smem:[#allocation48_spill]] %s3220_s9  ;;  %s3059_s9 = smov 38  }
  0x2b   :  { %3656 = sst [smem:[#allocation49_spill]] %s3225_s5 }
  0x2c   :  { %s3230_s8 = sld [smem:[%s3636_s0 + %s3048_s22]]   ;;  %s3052_s22 = smov 34  }
  0x2d   :  { %s3235_s21 = sld [smem:[%s3636_s0 + %s3049_s3]]   ;;  %s3053_s3 = smov 35  }
  0x2e   :  { %3659 = sst [smem:[#allocation52_spill]] %s3240_s13 }
  0x2f   :  { %s3245_s5 = sld [smem:[%s3636_s0 + %s3051_s15]]   ;;  %s3055_s15 = smov 37  }
  0x30   :  { %s3260_s13 = sld [smem:[%s3636_s0 + %s3054_s4]]  }
  0x31   :  { %s2171_s18 = sld [smem:[%s3636_s0 + %s3059_s9]]  }
  0x32   :  { %3657 = sst [smem:[#allocation50_spill]] %s3230_s8 }
  0x33   :  { %3658 = sst [smem:[#allocation51_spill]] %s3235_s21 }
  0x34   :  { %s3250_s8 = sld [smem:[%s3636_s0 + %s3052_s22]]   ;;  %s3056_s22 = smov 39  }
  0x35   :  { %3660 = sst [smem:[#allocation53_spill]] %s3245_s5 }
  0x36   :  { %s3255_s21 = sld [smem:[%s3636_s0 + %s3053_s3]]   ;;  %s3057_s3 = smov 9  }
  0x37   :  { %3663 = sst [smem:[#allocation56_spill]] %s3260_s13  ;;  %v90_v3 = vstv %s2171_s18 }
  0x38   :  { %s3265_s5 = sld [smem:[%s3636_s0 + %s3055_s15]]   ;;  %91 = vst [vmem:[#allocation5] sm:$0x1] %v90_v3 }
  0x39   :  { %s2161_s13 = sld [smem:[%s3636_s0 + %s3058_s7]]  }
  0x3a   :  { %3661 = sst [smem:[#allocation54_spill]] %s3250_s8 }
  0x3b   :  { %s3270_s8 = sld [smem:[%s3636_s0 + %s3056_s22]]  }
  0x3c   :  { %3662 = sst [smem:[#allocation55_spill]] %s3255_s21 }
  0x3d   :  { %s2142_s21 = sld [smem:[%s3636_s0 + %s3057_s3]]  }
  0x3f   :  { %v88_v2 = vstv %s2161_s13 }
  0x40   :  { %89 = vst [vmem:[#allocation4] sm:$0x1] %v88_v2 }
  0x43   :  { %v86_v1 = vstv %s2142_s21 }
  0x44   :  { %87 = vst [vmem:[#allocation3] sm:$0x1] %v86_v1 }
  0x45   :  { %92 = vsyncpa [#allocation7], 0 }
  0x46   :  { %93 = vsyncpa [#allocation9], 0 }
  0x47   :  { %94 = vsyncpa [#allocation12], 0 }
  0x48   :  { %95 = vsyncpa [#allocation15], 0 }
  0x49   :  { %96 = vsyncpa [#allocation18], 0 }
  0x4a   :  { %97 = vsyncpa [#allocation21], 0 }
  0x4b   :  { %98 = vsyncpa [#allocation24], 0 }
  0x4c   :  { %99 = vsyncpa [#allocation27], 0  ;;  %s3060_s22 = smov [#allocation8]   ;;  %s3061_s0 = smov [#allocation11]  }
  0x4d   :  { %s126_s23 = sshll.u32 %s3060_s22, 4  ;;  %s156_s9 = sshll.u32 %s3061_s0, 4  ;;  %s127_s23 = int_to_ptr.vmem [resolvable:$true] %s126_s23  ;;  %s157_s9 = int_to_ptr.vmem [resolvable:$true] %s156_s9 }
  0x4e   :  { %s2697_s13 = scalar_lea.hbm %s3122_s29, 16 }
  0x4f   :  { %p2698_p0 = scmp.ne.s32.totalorder %s3122_s29, %s2697_s13  ;;  %p2701_p1 = scmp.lt.u32.totalorder %s2697_s13, %s3122_s29 }
  0x51   :  { %p2703_p2 = pnand %p2701_p1, %p2698_p0 }
  0x53   :  { %2706 = shalt.err (!%p2703_p2)
}
  0x54   :  { %s2707_s21 = scalar_lea.vmem %s127_s23, 16  ;;  %s2711_s26 = scalar_lea.vmem %s127_s23, 32 }
  0x55   :  { %p2708_p3 = scmp.ne.s32.totalorder %s127_s23, %s2707_s21  ;;  %p2712_p4 = scmp.lt.s32.totalorder %s127_s23, %s127_s23 }
  0x56   :  { %p2713_p5 = scmp.lt.s32.totalorder %s2711_s26, %s2707_s21 }
  0x58   :  { %p2714_p6 = por %p2713_p5, %p2712_p4 }
  0x5a   :  { %p2715_p7 = pnand %p2714_p6, %p2708_p3 }
  0x5c   :  { %2718 = shalt.err (!%p2715_p7)
}
  0x5d   :  { %129 = dma.hbm_to_vmem [thread:$0]  %s3122_s29, 16, %s127_s23, [#allocation9]  }
  0x5e   :  { %s2719_s3 = scalar_lea.hbm %s3145_s24, 16 }
  0x5f   :  { %p2720_p8 = scmp.ne.s32.totalorder %s3145_s24, %s2719_s3  ;;  %p2723_p9 = scmp.lt.u32.totalorder %s2719_s3, %s3145_s24 }
  0x61   :  { %p2725_p10 = pnand %p2723_p9, %p2720_p8 }
  0x63   :  { %2728 = shalt.err (!%p2725_p10)
}
  0x64   :  { %s2729_s28 = scalar_lea.vmem %s157_s9, 16  ;;  %s2733_s1 = scalar_lea.vmem %s157_s9, 32 }
  0x65   :  { %p2730_p11 = scmp.ne.s32.totalorder %s157_s9, %s2729_s28  ;;  %p2734_p12 = scmp.lt.s32.totalorder %s157_s9, %s157_s9 }
  0x66   :  { %p2735_p13 = scmp.lt.s32.totalorder %s2733_s1, %s2729_s28 }
  0x68   :  { %p2736_p0 = por %p2735_p13, %p2734_p12 }
  0x6a   :  { %p2737_p1 = pnand %p2736_p0, %p2730_p11 }
  0x6c   :  { %2740 = shalt.err (!%p2737_p1)
}
  0x6d   :  { %159 = dma.hbm_to_vmem [thread:$0]  %s3145_s24, 16, %s157_s9, [#allocation12]  }
  0x6e   :  { %s3062_s7 = smov [#allocation14]   ;;  %s3063_s4 = smov [#allocation17]  }
  0x6f   :  { %s176_s29 = sshll.u32 %s3062_s7, 4  ;;  %s202_s10 = sshll.u32 %s3063_s4, 4  ;;  %s177_s29 = int_to_ptr.vmem [resolvable:$true] %s176_s29  ;;  %s203_s10 = int_to_ptr.vmem [resolvable:$true] %s202_s10 }
  0x70   :  { %s2741_s16 = scalar_lea.hbm %s3155_s6, 16 }
  0x71   :  { %p2742_p2 = scmp.ne.s32.totalorder %s3155_s6, %s2741_s16  ;;  %p2745_p3 = scmp.lt.u32.totalorder %s2741_s16, %s3155_s6 }
  0x73   :  { %p2747_p4 = pnand %p2745_p3, %p2742_p2 }
  0x75   :  { %2750 = shalt.err (!%p2747_p4)
}
  0x76   :  { %s2751_s15 = scalar_lea.vmem %s177_s29, 16  ;;  %s2755_s18 = scalar_lea.vmem %s177_s29, 32 }
  0x77   :  { %p2752_p5 = scmp.ne.s32.totalorder %s177_s29, %s2751_s15  ;;  %p2756_p6 = scmp.lt.s32.totalorder %s177_s29, %s177_s29 }
  0x78   :  { %p2757_p7 = scmp.lt.s32.totalorder %s2755_s18, %s2751_s15 }
  0x7a   :  { %p2758_p8 = por %p2757_p7, %p2756_p6 }
  0x7c   :  { %p2759_p9 = pnand %p2758_p8, %p2752_p5 }
  0x7e   :  { %2762 = shalt.err (!%p2759_p9)
}
  0x7f   :  { %179 = dma.hbm_to_vmem [thread:$0]  %s3155_s6, 16, %s177_s29, [#allocation15]  }
  0x80   :  { %s2763_s24 = scalar_lea.hbm %s3180_s11, 16 }
  0x81   :  { %p2764_p10 = scmp.ne.s32.totalorder %s3180_s11, %s2763_s24  ;;  %p2767_p11 = scmp.lt.u32.totalorder %s2763_s24, %s3180_s11 }
  0x83   :  { %p2769_p12 = pnand %p2767_p11, %p2764_p10 }
  0x85   :  { %2772 = shalt.err (!%p2769_p12)
}
  0x86   :  { %s2773_s22 = scalar_lea.vmem %s203_s10, 16  ;;  %s2777_s23 = scalar_lea.vmem %s203_s10, 32 }
  0x87   :  { %p2774_p13 = scmp.ne.s32.totalorder %s203_s10, %s2773_s22  ;;  %p2778_p0 = scmp.lt.s32.totalorder %s203_s10, %s203_s10 }
  0x88   :  { %p2779_p1 = scmp.lt.s32.totalorder %s2777_s23, %s2773_s22 }
  0x8a   :  { %p2780_p2 = por %p2779_p1, %p2778_p0 }
  0x8c   :  { %p2781_p3 = pnand %p2780_p2, %p2774_p13 }
  0x8e   :  { %2784 = shalt.err (!%p2781_p3)
}
  0x8f   :  { %205 = dma.hbm_to_vmem [thread:$0]  %s3180_s11, 16, %s203_s10, [#allocation18]  }
  0x90   :  { %s3064_s0 = smov [#allocation20]   ;;  %s3065_s9 = smov [#allocation23]  }
  0x91   :  { %s225_s6 = sshll.u32 %s3064_s0, 4  ;;  %s248_s13 = sshll.u32 %s3065_s9, 4  ;;  %s226_s6 = int_to_ptr.vmem [resolvable:$true] %s225_s6  ;;  %s3297_s13 = int_to_ptr.vmem [resolvable:$true] %s248_s13 }
  0x92   :  { %s2785_s21 = scalar_lea.hbm %s3200_s14, 512 }
  0x93   :  { %p2786_p4 = scmp.ne.s32.totalorder %s3200_s14, %s2785_s21  ;;  %p2789_p5 = scmp.lt.u32.totalorder %s2785_s21, %s3200_s14 }
  0x95   :  { %p2791_p6 = pnand %p2789_p5, %p2786_p4 }
  0x97   :  { %2794 = shalt.err (!%p2791_p6)
}
  0x98   :  { %s2795_s26 = scalar_lea.vmem %s226_s6, 512  ;;  %p2800_p8 = scmp.lt.s32.totalorder %s226_s6, %s226_s6 }
  0x99   :  { %p2796_p7 = scmp.ne.s32.totalorder %s226_s6, %s2795_s26  ;;  %p2801_p9 = scmp.lt.s32.totalorder %s2795_s26, %s2795_s26 }
  0x9b   :  { %p2802_p10 = por %p2801_p9, %p2800_p8 }
  0x9d   :  { %p2803_p11 = pnand %p2802_p10, %p2796_p7 }
  0x9f   :  { %2806 = shalt.err (!%p2803_p11)
}
  0xa0   :  { %s3066_s11 = smov 128   ;;  %s3067_s3 = smov 8  }
  0xa1   :  { %231 = dma.hbm_to_vmem [thread:$0]  %s3200_s14, 512, %s226_s6, [#allocation21], %s3066_s11, %s3066_s11, %s3067_s3  }
  0xa2   :  { %s2807_s28 = scalar_lea.hbm %s3210_s12, 16 }
  0xa3   :  { %p2808_p12 = scmp.ne.s32.totalorder %s3210_s12, %s2807_s28  ;;  %p2811_p13 = scmp.lt.u32.totalorder %s2807_s28, %s3210_s12 }
  0xa5   :  { %p2813_p0 = pnand %p2811_p13, %p2808_p12 }
  0xa7   :  { %2816 = shalt.err (!%p2813_p0)
}
  0xa8   :  { %s2817_s1 = scalar_lea.vmem %s3297_s13, 16  ;;  %s2821_s7 = scalar_lea.vmem %s3297_s13, 32 }
  0xa9   :  { %p2818_p1 = scmp.ne.s32.totalorder %s3297_s13, %s2817_s1  ;;  %p2822_p2 = scmp.lt.s32.totalorder %s3297_s13, %s3297_s13 }
  0xaa   :  { %p2823_p3 = scmp.lt.s32.totalorder %s2821_s7, %s2817_s1 }
  0xac   :  { %p2824_p4 = por %p2823_p3, %p2822_p2 }
  0xae   :  { %p2825_p5 = pnand %p2824_p4, %p2818_p1 }
  0xb0   :  { %2828 = shalt.err (!%p2825_p5)
}
  0xb1   :  { %251 = dma.hbm_to_vmem [thread:$0]  %s3210_s12, 16, %s3297_s13, [#allocation24]  }
  0xb2   :  { %s3068_s14 = smov [#allocation6]   ;;  %s3069_s4 = smov [#allocation10]  }
  0xb3   :  { %s112_s29 = sshll.u32 %s3068_s14, 4  ;;  %s143_s10 = sshll.u32 %s3069_s4, 4  ;;  %s113_s29 = int_to_ptr.vmem [resolvable:$true] %s112_s29  ;;  %s3316_s10 = int_to_ptr.vmem [resolvable:$true] %s143_s10 }
  0xb4   :  { %s2829_s16 = scalar_lea.hbm %s3107_s17, 16 }
  0xb5   :  { %p2830_p6 = scmp.ne.s32.totalorder %s3107_s17, %s2829_s16  ;;  %p2833_p7 = scmp.lt.u32.totalorder %s2829_s16, %s3107_s17 }
  0xb7   :  { %p2835_p8 = pnand %p2833_p7, %p2830_p6 }
  0xb9   :  { %2838 = shalt.err (!%p2835_p8)
}
  0xba   :  { %s2839_s15 = scalar_lea.vmem %s113_s29, 16  ;;  %s2843_s18 = scalar_lea.vmem %s113_s29, 32 }
  0xbb   :  { %p2840_p9 = scmp.ne.s32.totalorder %s113_s29, %s2839_s15  ;;  %p2844_p10 = scmp.lt.s32.totalorder %s113_s29, %s113_s29 }
  0xbc   :  { %p2845_p11 = scmp.lt.s32.totalorder %s2843_s18, %s2839_s15 }
  0xbe   :  { %p2846_p12 = por %p2845_p11, %p2844_p10 }
  0xc0   :  { %p2847_p13 = pnand %p2846_p12, %p2840_p9 }
  0xc2   :  { %2850 = shalt.err (!%p2847_p13)
}
  0xc3   :  { %115 = dma.hbm_to_vmem [thread:$0]  %s3107_s17, 16, %s113_s29, [#allocation7]  }
  0xc4   :  { %s2851_s12 = scalar_lea.hbm %s3140_s19, 512 }
  0xc5   :  { %p2852_p0 = scmp.ne.s32.totalorder %s3140_s19, %s2851_s12  ;;  %p2855_p1 = scmp.lt.u32.totalorder %s2851_s12, %s3140_s19 }
  0xc7   :  { %p2857_p2 = pnand %p2855_p1, %p2852_p0 }
  0xc9   :  { %2860 = shalt.err (!%p2857_p2)
}
  0xca   :  { %s2861_s24 = scalar_lea.vmem %s3316_s10, 512  ;;  %p2866_p4 = scmp.lt.s32.totalorder %s3316_s10, %s3316_s10 }
  0xcb   :  { %p2862_p3 = scmp.ne.s32.totalorder %s3316_s10, %s2861_s24  ;;  %p2867_p5 = scmp.lt.s32.totalorder %s2861_s24, %s2861_s24 }
  0xcd   :  { %p2868_p6 = por %p2867_p5, %p2866_p4 }
  0xcf   :  { %p2869_p7 = pnand %p2868_p6, %p2862_p3 }
  0xd1   :  { %2872 = shalt.err (!%p2869_p7)
}
  0xd2   :  { %149 = dma.hbm_to_vmem [thread:$0]  %s3140_s19, 512, %s3316_s10, [#allocation9], %s3066_s11, %s3066_s11, %s3067_s3  }
  0xd3   :  { %s3070_s17 = smov [#allocation13]   ;;  %s3071_s23 = smov [#allocation16]  }
  0xd4   :  { %s166_s22 = sshll.u32 %s3070_s17, 4  ;;  %s192_s0 = sshll.u32 %s3071_s23, 4  ;;  %s167_s22 = int_to_ptr.vmem [resolvable:$true] %s166_s22  ;;  %s193_s0 = int_to_ptr.vmem [resolvable:$true] %s192_s0 }
  0xd5   :  { %s2873_s6 = scalar_lea.hbm %s3150_s30, 16 }
  0xd6   :  { %p2874_p8 = scmp.ne.s32.totalorder %s3150_s30, %s2873_s6  ;;  %p2877_p9 = scmp.lt.u32.totalorder %s2873_s6, %s3150_s30 }
  0xd8   :  { %p2879_p10 = pnand %p2877_p9, %p2874_p8 }
  0xda   :  { %2882 = shalt.err (!%p2879_p10)
}
  0xdb   :  { %s2883_s9 = scalar_lea.vmem %s167_s22, 16  ;;  %s2887_s13 = scalar_lea.vmem %s167_s22, 32 }
  0xdc   :  { %p2884_p11 = scmp.ne.s32.totalorder %s167_s22, %s2883_s9  ;;  %p2888_p12 = scmp.lt.s32.totalorder %s167_s22, %s167_s22 }
  0xdd   :  { %p2889_p13 = scmp.lt.s32.totalorder %s2887_s13, %s2883_s9 }
  0xdf   :  { %p2890_p0 = por %p2889_p13, %p2888_p12 }
  0xe1   :  { %p2891_p1 = pnand %p2890_p0, %p2884_p11 }
  0xe3   :  { %2894 = shalt.err (!%p2891_p1)
}
  0xe4   :  { %169 = dma.hbm_to_vmem [thread:$0]  %s3150_s30, 16, %s167_s22, [#allocation12]  }
  0xe5   :  { %s2895_s19 = scalar_lea.hbm %s3175_s2, 16 }
  0xe6   :  { %p2896_p2 = scmp.ne.s32.totalorder %s3175_s2, %s2895_s19  ;;  %p2899_p3 = scmp.lt.u32.totalorder %s2895_s19, %s3175_s2 }
  0xe8   :  { %p2901_p4 = pnand %p2899_p3, %p2896_p2 }
  0xea   :  { %2904 = shalt.err (!%p2901_p4)
}
  0xeb   :  { %s2905_s21 = scalar_lea.vmem %s193_s0, 16  ;;  %s2909_s26 = scalar_lea.vmem %s193_s0, 32 }
  0xec   :  { %p2906_p5 = scmp.ne.s32.totalorder %s193_s0, %s2905_s21  ;;  %p2910_p6 = scmp.lt.s32.totalorder %s193_s0, %s193_s0 }
  0xed   :  { %p2911_p7 = scmp.lt.s32.totalorder %s2909_s26, %s2905_s21 }
  0xef   :  { %p2912_p8 = por %p2911_p7, %p2910_p6 }
  0xf1   :  { %p2913_p9 = pnand %p2912_p8, %p2906_p5 }
  0xf3   :  { %2916 = shalt.err (!%p2913_p9)
}
  0xf4   :  { %195 = dma.hbm_to_vmem [thread:$0]  %s3175_s2, 16, %s193_s0, [#allocation15]  }
  0xf5   :  { %s3072_s11 = smov [#allocation19]   ;;  %s3073_s3 = smov [#allocation22]  }
  0xf6   :  { %s212_s30 = sshll.u32 %s3072_s11, 4  ;;  %s238_s28 = sshll.u32 %s3073_s3, 4  ;;  %s213_s30 = int_to_ptr.vmem [resolvable:$true] %s212_s30  ;;  %s239_s28 = int_to_ptr.vmem [resolvable:$true] %s238_s28 }
  0xf7   :  { %s2917_s1 = scalar_lea.hbm %s3185_s20, 16 }
  0xf8   :  { %p2918_p10 = scmp.ne.s32.totalorder %s3185_s20, %s2917_s1  ;;  %p2921_p11 = scmp.lt.u32.totalorder %s2917_s1, %s3185_s20 }
  0xfa   :  { %p2923_p12 = pnand %p2921_p11, %p2918_p10 }
  0xfc   :  { %2926 = shalt.err (!%p2923_p12)
}
  0xfd   :  { %s2927_s7 = scalar_lea.vmem %s213_s30, 16  ;;  %s2931_s14 = scalar_lea.vmem %s213_s30, 32 }
  0xfe   :  { %p2928_p13 = scmp.ne.s32.totalorder %s213_s30, %s2927_s7  ;;  %p2932_p0 = scmp.lt.s32.totalorder %s213_s30, %s213_s30 }
  0xff   :  { %p2933_p1 = scmp.lt.s32.totalorder %s2931_s14, %s2927_s7 }
 0x101   :  { %p2934_p2 = por %p2933_p1, %p2932_p0 }
 0x103   :  { %p2935_p3 = pnand %p2934_p2, %p2928_p13 }
 0x105   :  { %2938 = shalt.err (!%p2935_p3)
}
 0x106   :  { %215 = dma.hbm_to_vmem [thread:$0]  %s3185_s20, 16, %s213_s30, [#allocation18]  }
 0x107   :  { %s2939_s2 = scalar_lea.hbm %s3205_s25, 16 }
 0x108   :  { %p2940_p4 = scmp.ne.s32.totalorder %s3205_s25, %s2939_s2  ;;  %p2943_p5 = scmp.lt.u32.totalorder %s2939_s2, %s3205_s25 }
 0x10a   :  { %p2945_p6 = pnand %p2943_p5, %p2940_p4 }
 0x10c   :  { %2948 = shalt.err (!%p2945_p6)
}
 0x10d   :  { %s2949_s29 = scalar_lea.vmem %s239_s28, 16  ;;  %s2953_s4 = scalar_lea.vmem %s239_s28, 32 }
 0x10e   :  { %p2950_p7 = scmp.ne.s32.totalorder %s239_s28, %s2949_s29  ;;  %p2954_p8 = scmp.lt.s32.totalorder %s239_s28, %s239_s28 }
 0x10f   :  { %p2955_p9 = scmp.lt.s32.totalorder %s2953_s4, %s2949_s29 }
 0x111   :  { %p2956_p10 = por %p2955_p9, %p2954_p8 }
 0x113   :  { %p2957_p11 = pnand %p2956_p10, %p2950_p7 }
 0x115   :  { %2960 = shalt.err (!%p2957_p11)
}
 0x116   :  { %241 = dma.hbm_to_vmem [thread:$0]  %s3205_s25, 16, %s239_s28, [#allocation21]  }
 0x117   :  { %s3074_s10 = smov [#allocation25]   ;;  %s3075_s16 = smov [#allocation26]  }
 0x118   :  { %s258_s20 = sshll.u32 %s3074_s10, 4  ;;  %s268_s15 = sshll.u32 %s3075_s16, 4  ;;  %s259_s20 = int_to_ptr.vmem [resolvable:$true] %s258_s20  ;;  %s269_s15 = int_to_ptr.vmem [resolvable:$true] %s268_s15 }
 0x119   :  { %s2961_s18 = scalar_lea.hbm %s3215_s27, 16 }
 0x11a   :  { %p2962_p12 = scmp.ne.s32.totalorder %s3215_s27, %s2961_s18  ;;  %p2965_p13 = scmp.lt.u32.totalorder %s2961_s18, %s3215_s27 }
 0x11c   :  { %p2967_p0 = pnand %p2965_p13, %p2962_p12 }
 0x11e   :  { %2970 = shalt.err (!%p2967_p0)
}
 0x11f   :  { %s2971_s12 = scalar_lea.vmem %s259_s20, 16  ;;  %s2975_s24 = scalar_lea.vmem %s259_s20, 32 }
 0x120   :  { %p2972_p1 = scmp.ne.s32.totalorder %s259_s20, %s2971_s12  ;;  %p2976_p2 = scmp.lt.s32.totalorder %s259_s20, %s259_s20 }
 0x121   :  { %p2977_p3 = scmp.lt.s32.totalorder %s2975_s24, %s2971_s12 }
 0x123   :  { %p2978_p4 = por %p2977_p3, %p2976_p2 }
 0x125   :  { %p2979_p5 = pnand %p2978_p4, %p2972_p1 }
 0x127   :  { %2982 = shalt.err (!%p2979_p5)
}
 0x128   :  { %s3664_s25 = sld [smem:[#allocation48_spill]] }
 0x129   :  { %261 = dma.hbm_to_vmem [thread:$0]  %s3215_s27, 16, %s259_s20, [#allocation24]  }
 0x12e   :  { %s2983_s17 = scalar_lea.hbm %s3664_s25, 16 }
 0x12f   :  { %p2984_p6 = scmp.ne.s32.totalorder %s3664_s25, %s2983_s17  ;;  %p2987_p7 = scmp.lt.u32.totalorder %s2983_s17, %s3664_s25 }
 0x131   :  { %p2989_p8 = pnand %p2987_p7, %p2984_p6 }
 0x133   :  { %2992 = shalt.err (!%p2989_p8)
}
 0x134   :  { %s2993_s22 = scalar_lea.vmem %s269_s15, 16  ;;  %s2997_s23 = scalar_lea.vmem %s269_s15, 32 }
 0x135   :  { %p2994_p9 = scmp.ne.s32.totalorder %s269_s15, %s2993_s22  ;;  %p2998_p10 = scmp.lt.s32.totalorder %s269_s15, %s269_s15 }
 0x136   :  { %p2999_p11 = scmp.lt.s32.totalorder %s2997_s23, %s2993_s22 }
 0x138   :  { %p3000_p12 = por %p2999_p11, %p2998_p10 }
 0x13a   :  { %p3001_p13 = pnand %p3000_p12, %p2994_p9 }
 0x13c   :  { %3004 = shalt.err (!%p3001_p13)
}
 0x13d   :  { %271 = dma.hbm_to_vmem [thread:$0]  %s3664_s25, 16, %s269_s15, [#allocation27]  }
 0x13e   :  { %3005 = dma.done.wait [#allocation7], 16  }
 0x13f   :  { %3006 = vsyncadd [#allocation7], 4294967280 }
 0x140   :  { %3007 = dma.done.wait [#allocation9], 528  }
 0x141   :  { %3008 = vsyncadd [#allocation9], 4294966768 }
 0x142   :  { %3009 = dma.done.wait [#allocation12], 32  }
 0x143   :  { %3010 = vsyncadd [#allocation12], 4294967264 }
 0x144   :  { %3011 = dma.done.wait [#allocation15], 32  }
 0x145   :  { %3012 = vsyncadd [#allocation15], 4294967264 }
 0x146   :  { %3013 = dma.done.wait [#allocation18], 32  }
 0x147   :  { %3014 = vsyncadd [#allocation18], 4294967264 }
 0x148   :  { %3015 = dma.done.wait [#allocation21], 528  }
 0x149   :  { %3016 = vsyncadd [#allocation21], 4294966768 }
 0x14a   :  { %3017 = dma.done.wait [#allocation24], 32  }
 0x14b   :  { %3018 = vsyncadd [#allocation24], 4294967264 }
 0x14c   :  { %3019 = dma.done.wait [#allocation27], 16  }
 0x14d   :  { %3020 = vsyncadd [#allocation27], 4294967280  ;;  %s3665_s27 = sld [smem:[#allocation38_spill]]  ;;  %s3666_s0 = sld [smem:[#allocation39_spill]]  ;;  %v3076_v4 = vmov 0.0|0.0   ;;  %vm3077_vm0 = vmmov 0  }
 0x14e   :  { %2440 = vmatprep.subr.bf16.mxu0 %v3076_v4  ;;  %2453 = vmatprep.subr.bf16.mxu1 %v3076_v4  ;;  %v3078_v5 = vmov 0.0   ;;  %s3667_s6 = sld [smem:[#allocation41_spill]]  ;;  %v3378_v22 = vld [vmem:[#allocation8] ss:$0 sm:$0xff]  ;;  %s3079_s9 = smov 32   ;;  %vm356_vm1 = vcmask 1045504  }
 0x14f   :  { %2320 = vmatprep.mubr.msk.f32.mxu0 %vm3077_vm0, %v3078_v5  ;;  %2339 = vmatprep.mubr.msk.f32.mxu1 %vm3077_vm0, %v3078_v5  ;;  %s3668_s13 = sld [smem:[#allocation36_spill]]  ;;  %s3080_s19 = smov 64   ;;  %vm3081_vm2 = vmmov 1   ;;  %vm352_vm4 = vcmask 506880   ;;  %v2173_v36 = vld [vmem:[#allocation6] ss:$0 sm:$0xff] }
 0x150   :  { %454 = vrot.lane.b32.xlu0 %v3378_v22, %s3079_s9  ;;  %478 = vrot.lane.b32.xlu1 %v3378_v22, %s3080_s19  ;;  %s3669_s21 = sld [smem:[#allocation37_spill]]  ;;  %vm2451_vm3 = vmpackc.low %vm356_vm1, %vm3081_vm2  ;;  %s3670_s26 = sld [smem:[#allocation40_spill]]  ;;  %v431_v52 = vld [vmem:[#allocation2] sm:$0x1]  ;;  %v619_v53 = vld [vmem:[#allocation3] sm:$0x1] }
 0x151   :  { %s3082_s11 = smov 96   ;;  %2526 = vpush %v431_v52  ;;  %vm440_vm5 = vcmask 261120   ;;  %s3671_s28 = sld [smem:[#allocation42_spill]]  ;;  %vm843_vm6 = vcmask 130112   ;;  %vm868_vm8 = vcmask 130048   ;;  %vm1915_vm1 = vcmask 523264  }
 0x152   :  { %2528 = vpush %v619_v53  ;;  %s3672_s1 = sld [smem:[#allocation45_spill]]  ;;  %s3673_s7 = sld [smem:[#allocation43_spill]] }
 0x153   :  { %v337_v6 = vld [vmem:[%s3665_s27] sm:$0xff]  ;;  %v338_v7 = vld [vmem:[%s3665_s27 + $0x8] sm:$0xff]  ;;  %v339_v11 = vld [vmem:[%s3665_s27 + $0x10] sm:$0xff]  ;;  %s3674_s14 = sld [smem:[#allocation44_spill]]  ;;  %s3675_s2 = sld [smem:[#allocation46_spill]] }
 0x154   :  { %v527_v8 = vld [vmem:[%s3666_s0] sm:$0xff]  ;;  %v2441_v9 = vpack.c.bf16 %v338_v7, %v337_v6  ;;  %v528_v10 = vld [vmem:[%s3666_s0 + $0x8] sm:$0xff]  ;;  %v340_v12 = vld [vmem:[%s3665_s27 + $0x18] sm:$0xff]  ;;  %s3676_s29 = sld [smem:[#allocation47_spill]]  ;;  %s3677_s4 = sld [smem:[#allocation50_spill]] }
 0x155   :  { %v2454_v13 = vpack.c.bf16 %v528_v10, %v527_v8  ;;  %v529_v14 = vld [vmem:[%s3666_s0 + $0x10] sm:$0xff]  ;;  %v530_v15 = vld [vmem:[%s3666_s0 + $0x18] sm:$0xff]  ;;  %v2444_v16 = vpack.c.bf16 %v340_v12, %v339_v11  ;;  %v341_v18 = vld [vmem:[%s3665_s27 + $0x20] sm:$0xff]  ;;  %s3678_s10 = sld [smem:[#allocation49_spill]]  ;;  %s3679_s16 = sld [smem:[#allocation53_spill]] }
 0x156   :  { %2442 = vmatpush3.bf16.msra.mxu0 %v2441_v9  ;;  %v2457_v17 = vpack.c.bf16 %v530_v15, %v529_v14  ;;  %v342_v19 = vld [vmem:[%s3665_s27 + $0x28] sm:$0xff]  ;;  %v531_v20 = vld [vmem:[%s3666_s0 + $0x20] sm:$0xff]  ;;  %v343_v25 = vld [vmem:[%s3665_s27 + $0x30] sm:$0xff]  ;;  %s3680_s15 = sld [smem:[#allocation51_spill]]  ;;  %s3681_s18 = sld [smem:[#allocation52_spill]] }
 0x157   :  { %2455 = vmatpush3.bf16.msra.mxu1 %v2454_v13  ;;  %2443 = vmatprep.subr.bf16.mxu0 %v3076_v4  ;;  %v532_v21 = vld [vmem:[%s3666_s0 + $0x28] sm:$0xff]  ;;  %v2447_v23 = vpack.c.bf16 %v342_v19, %v341_v18  ;;  %v344_v26 = vld [vmem:[%s3665_s27 + $0x38] sm:$0x3f]  ;;  %v3386_v27 = vld [vmem:[%s3667_s6] ss:$0 sm:$0xff]  ;;  %s3682_s12 = sld [smem:[#allocation54_spill]] }
 0x158   :  { %2456 = vmatprep.subr.bf16.mxu1 %v3076_v4  ;;  %v2460_v24 = vpack.c.bf16 %v532_v21, %v531_v20  ;;  %v533_v28 = vld [vmem:[%s3666_s0 + $0x30] sm:$0xff]  ;;  %v534_v29 = vld [vmem:[%s3666_s0 + $0x38] sm:$0x3f]  ;;  %v2450_v30 = vpack.c.bf16 %v344_v26, %v343_v25  ;;  %641 = vrot.lane.b32.xlu0 %v3386_v27, %s3079_s9  ;;  %v336_v32 = vld [vmem:[%s3668_s13] sm:$0xff]  ;;  %s3683_s24 = sld [smem:[#allocation55_spill]] }
 0x159   :  { %v2463_v31 = vpack.c.bf16 %v534_v29, %v533_v28  ;;  %665 = vrot.lane.b32.xlu1 %v3386_v27, %s3080_s19  ;;  %v526_v33 = vld [vmem:[%s3669_s21] sm:$0xff] }
 0x15a   :  { %2445 = vmatpush3.bf16.msra.mxu0 %v2444_v16  ;;  %v2181_v37 = vld [vmem:[%s3670_s26] ss:$0 sm:$0xff] }
 0x15b   :  { %2458 = vmatpush3.bf16.msra.mxu1 %v2457_v17  ;;  %2446 = vmatprep.subr.bf16.mxu0 %v3076_v4 }
 0x15c   :  { %2459 = vmatprep.subr.bf16.mxu1 %v3076_v4  ;;  %502 = vrot.lane.b32.xlu0 %v3378_v22, %s3082_s11 }
 0x15d   :  { %689 = vrot.lane.b32.xlu1 %v3386_v27, %s3082_s11 }
 0x15e   :  { %2448 = vmatpush3.bf16.msra.mxu0 %v2447_v23 }
 0x15f   :  { %2461 = vmatpush3.bf16.msra.mxu1 %v2460_v24  ;;  %2449 = vmatprep.subr.bf16.mxu0 %v3076_v4 }
 0x160   :  { %2462 = vmatprep.subr.bf16.mxu1 %v3076_v4 }
 0x162   :  { %2452 = vmatpush3.bf16.msk.msra.mxu0 %vm2451_vm3, %v2450_v30 }
 0x163   :  { %2465 = vmatpush3.bf16.msk.msra.mxu1 %vm2451_vm3, %v2463_v31  ;;  %vm1992_vm3 = vcmask 259072  }
 0x165   :  { %2321 = vmatmul.mubr.msk.f32.vlgmr.msra.gmra.mrb[0].mxu0 %vm352_vm4, %v336_v32 }
 0x166   :  { %2340 = vmatmul.mubr.msk.f32.vlgmr.msra.gmra.mrb[0].mxu1 %vm352_vm4, %v526_v33  ;;  %vm2120_vm4 = vcmask 5120  }
 0x182   :  { %s2527_s30 = spop %2526 }
 0x183   :  { %s2529_s3 = spop %2528  ;;  %v3434_v10 = vstv %s2527_s30 }
 0x184   :  { %v3436_v11 = vstv %s2529_s3 }
 0x1c2   :  { %v455_v34 = vpop.permute.xlu0 %454  ;;  %v479_v35 = vpop.permute.xlu1 %478 }
 0x1ca   :  { %v642_v42 = vpop.permute.xlu0 %641 }
 0x1cb   :  { %v666_v45 = vpop.permute.xlu1 %665 }
 0x1ce   :  { %v503_v50 = vpop.permute.xlu0 %502 }
 0x1cf   :  { %v690_v51 = vpop.permute.xlu1 %689 }
 0x238   :  { %v426_v38 = vpop.f32.mrb[0].mxu0 }
 0x239   :  { %v3406_v39 = vadd.f32 %v2173_v36, %v426_v38  ;;  %v614_v40 = vpop.f32.mrb[0].mxu1  ;;  %v2322_v41 = vpop.f32.mrb[1].mxu0  ;;  %v715_v36 = vld [vmem:[#allocation10] sm:$0xff] }
 0x23a   :  { %v3408_v43 = vadd.f32 %v2181_v37, %v614_v40  ;;  %v2341_v44 = vpop.f32.mrb[1].mxu1  ;;  %v716_v37 = vld [vmem:[#allocation10 + $0x8] sm:$0xff] }
 0x23b   :  { %v457_v46 = vmul.f32 %v455_v34, %v3406_v39  ;;  %v481_v49 = vmul.f32 %v479_v35, %v3406_v39  ;;  %v505_v54 = vmul.f32 %v503_v50, %v3406_v39  ;;  %v439_v2 = vmul.f32 %v3378_v22, %v3406_v39 }
 0x23c   :  { %v644_v47 = vmul.f32 %v642_v42, %v3408_v43  ;;  %v668_v48 = vmul.f32 %v666_v45, %v3408_v43  ;;  %v692_v55 = vmul.f32 %v690_v51, %v3408_v43  ;;  %v627_v8 = vmul.f32 %v3386_v27, %v3408_v43 }
 0x23d   :  { %459 = vrot.lane.b32.xlu0 %v457_v46, %s3082_s11  ;;  %v441_v7 = vsel %vm440_vm5, %v439_v2, 0.0  ;;  %v2466_v40 = vpack.c.bf16 %v716_v37, %v715_v36  ;;  %v717_v46 = vld [vmem:[#allocation10 + $0x10] sm:$0xff]  ;;  %v832_v37 = vlaneseq }
 0x23e   :  { %646 = vrot.lane.b32.xlu1 %v644_v47, %s3082_s11  ;;  %v628_v9 = vsel %vm440_vm5, %v627_v8, 0.0  ;;  %v718_v47 = vld [vmem:[#allocation10 + $0x18] sm:$0xff] }
 0x23f   :  { %2467 = vmatprep.subr.bf16.mxu0 %v2466_v40  ;;  %v2470_v50 = vpack.c.bf16 %v718_v47, %v717_v46 }
 0x240   :  { %2469 = vmatpush3.bf16.msra.mxu0 %v2466_v40  ;;  %v835_v40 = vshrl.u32 %v832_v37, 7 }
 0x241   :  { %483 = vrot.lane.b32.xlu0 %v481_v49, %s3080_s19  ;;  %2471 = vmatprep.subr.bf16.mxu0 %v2470_v50 }
 0x242   :  { %670 = vrot.lane.b32.xlu1 %v668_v48, %s3080_s19 }
 0x244   :  { %2473 = vmatpush3.bf16.msra.mxu0 %v2470_v50 }
 0x245   :  { %507 = vrot.lane.b32.xlu0 %v505_v54, %s3079_s9 }
 0x246   :  { %694 = vrot.lane.b32.xlu1 %v692_v55, %s3079_s9 }
 0x2af   :  { %v460_v56 = vpop.permute.xlu0 %459 }
 0x2b0   :  { %v647_v57 = vpop.permute.xlu1 %646  ;;  %v462_v58 = vsel %vm440_vm5, %v460_v56, 0.0 }
 0x2b1   :  { %v649_v59 = vsel %vm440_vm5, %v647_v57, 0.0  ;;  %463 = vadd.xlane.f32.xlu0 %v462_v58 }
 0x2b2   :  { %650 = vadd.xlane.f32.xlu1 %v649_v59 }
 0x2b3   :  { %v484_v60 = vpop.permute.xlu0 %483 }
 0x2b4   :  { %v671_v61 = vpop.permute.xlu1 %670  ;;  %v486_v62 = vsel %vm440_vm5, %v484_v60, 0.0 }
 0x2b5   :  { %487 = vadd.xlane.f32.xlu0 %v486_v62  ;;  %v673_v0 = vsel %vm440_vm5, %v671_v61, 0.0 }
 0x2b7   :  { %v508_v63 = vpop.permute.xlu0 %507 }
 0x2b8   :  { %v510_v1 = vsel %vm440_vm5, %v508_v63, 0.0  ;;  %v695_v3 = vpop.permute.xlu1 %694 }
 0x2b9   :  { %674 = vadd.xlane.f32.xlu0 %v673_v0  ;;  %511 = vadd.xlane.f32.xlu1 %v510_v1  ;;  %v697_v6 = vsel %vm440_vm5, %v695_v3, 0.0 }
 0x2bd   :  { %698 = vadd.xlane.f32.xlu0 %v697_v6  ;;  %442 = vadd.xlane.f32.xlu1 %v441_v7 }
 0x2c1   :  { %629 = vadd.xlane.f32.xlu0 %v628_v9 }
 0x33e   :  { %v464_v12 = vpop.xlane.xlu0 %463 }
 0x33f   :  { %v651_v13 = vpop.xlane.xlu1 %650  ;;  %v465_v14 = vadd.f32 %v464_v12, %v3434_v10 }
 0x340   :  { %v652_v15 = vadd.f32 %v651_v13, %v3436_v11 }
 0x341   :  { %v2178_v16 = vmul.f32 -1.442695, %v465_v14 }
 0x342   :  { %v2186_v17 = vmul.f32 -1.442695, %v652_v15  ;;  %v488_v18 = vpop.xlane.xlu0 %487 }
 0x343   :  { %2597 = vpow2.f32 %v2178_v16  ;;  %v489_v19 = vadd.f32 %v488_v18, %v3434_v10 }
 0x344   :  { %2599 = vpow2.f32 %v2186_v17 }
 0x345   :  { %v2179_v20 = vmul.f32 -1.442695, %v489_v19 }
 0x346   :  { %v512_v21 = vpop.xlane.xlu1 %511  ;;  %v675_v22 = vpop.xlane.xlu0 %674 }
 0x347   :  { %2601 = vpow2.f32 %v2179_v20  ;;  %v513_v23 = vadd.f32 %v512_v21, %v3434_v10  ;;  %v676_v24 = vadd.f32 %v675_v22, %v3436_v11 }
 0x349   :  { %v2180_v25 = vmul.f32 -1.442695, %v513_v23  ;;  %v2187_v26 = vmul.f32 -1.442695, %v676_v24 }
 0x34a   :  { %v699_v27 = vpop.xlane.xlu0 %698  ;;  %v443_v62 = vpop.xlane.xlu1 %442 }
 0x34b   :  { %2603 = vpow2.f32 %v2180_v25  ;;  %v700_v28 = vadd.f32 %v699_v27, %v3436_v11  ;;  %v445_v63 = vadd.f32 %v3434_v10, %v443_v62 }
 0x34c   :  { %2605 = vpow2.f32 %v2187_v26 }
 0x34d   :  { %v2598_v29 = vpop.eup %2597  ;;  %v2188_v30 = vmul.f32 -1.442695, %v700_v28  ;;  %v2177_v1 = vmul.f32 -1.442695, %v445_v63 }
 0x34e   :  { %v2600_v31 = vpop.eup %2599  ;;  %v469_v32 = vadd.f32 1.0, %v2598_v29  ;;  %v630_v0 = vpop.xlane.xlu0 %629 }
 0x34f   :  { %v656_v33 = vadd.f32 1.0, %v2600_v31  ;;  %2607 = vpow2.f32 %v2188_v30  ;;  %v632_v2 = vadd.f32 %v3436_v11, %v630_v0 }
 0x350   :  { %2609 = vrcp.f32 %v469_v32 }
 0x351   :  { %v2602_v34 = vpop.eup %2601  ;;  %2611 = vrcp.f32 %v656_v33  ;;  %v2185_v3 = vmul.f32 -1.442695, %v632_v2 }
 0x352   :  { %v493_v35 = vadd.f32 1.0, %v2602_v34 }
 0x354   :  { %2613 = vrcp.f32 %v493_v35 }
 0x355   :  { %v2604_v38 = vpop.eup %2603 }
 0x356   :  { %v2606_v41 = vpop.eup %2605  ;;  %v517_v42 = vadd.f32 1.0, %v2604_v38  ;;  %v3472_v38 = vand.u32 127, %v832_v37 }
 0x357   :  { %v680_v44 = vadd.f32 1.0, %v2606_v41 }
 0x358   :  { %2615 = vrcp.f32 %v517_v42  ;;  %v838_v41 = vadd.s32 4294967288, %v3472_v38 }
 0x359   :  { %v2608_v45 = vpop.eup %2607  ;;  %2617 = vrcp.f32 %v680_v44  ;;  %v3478_v44 = vsub.s32 %v3472_v38, %v835_v40 }
 0x35a   :  { %v2610_v48 = vpop.eup %2609  ;;  %v704_v49 = vadd.f32 1.0, %v2608_v45  ;;  %v3475_v42 = vsub.s32 %v838_v41, %v835_v40 }
 0x35b   :  { %v2612_v51 = vpop.eup %2611  ;;  %v472_v52 = vmul.f32 %v2610_v48, %v3406_v39 }
 0x35c   :  { %2619 = vrcp.f32 %v704_v49  ;;  %v659_v53 = vmul.f32 %v2612_v51, %v3408_v43 }
 0x35d   :  { %474 = vrot.lane.b32.xlu1 %v472_v52, %s3082_s11  ;;  %2621 = vpow2.f32 %v2177_v1 }
 0x35e   :  { %v2614_v54 = vpop.eup %2613  ;;  %661 = vrot.lane.b32.xlu0 %v659_v53, %s3082_s11  ;;  %2623 = vpow2.f32 %v2185_v3  ;;  %v3484_v53 = vld [vmem:[%s3671_s28] sm:$0xff] }
 0x35f   :  { %v496_v55 = vmul.f32 %v2614_v54, %v3406_v39 }
 0x361   :  { %498 = vrot.lane.b32.xlu1 %v496_v55, %s3080_s19 }
 0x362   :  { %v2616_v56 = vpop.eup %2615 }
 0x363   :  { %v2618_v57 = vpop.eup %2617  ;;  %v520_v58 = vmul.f32 %v2616_v56, %v3406_v39 }
 0x364   :  { %v683_v59 = vmul.f32 %v2618_v57, %v3408_v43 }
 0x365   :  { %522 = vrot.lane.b32.xlu0 %v520_v58, %s3079_s9 }
 0x366   :  { %v2620_v60 = vpop.eup %2619  ;;  %685 = vrot.lane.b32.xlu1 %v683_v59, %s3080_s19  ;;  %v3488_v59 = vld [vmem:[%s3671_s28 + $0x8] sm:$0xff] }
 0x367   :  { %v707_v61 = vmul.f32 %v2620_v60, %v3408_v43  ;;  %v2622_v6 = vpop.eup %2621 }
 0x368   :  { %v449_v7 = vadd.f32 1.0, %v2622_v6  ;;  %v2624_v8 = vpop.eup %2623 }
 0x369   :  { %v636_v9 = vadd.f32 1.0, %v2624_v8 }
 0x36a   :  { %709 = vrot.lane.b32.xlu1 %v707_v61, %s3079_s9  ;;  %2625 = vrcp.f32 %v449_v7 }
 0x36b   :  { %2627 = vrcp.f32 %v636_v9 }
 0x374   :  { %v2626_v12 = vpop.eup %2625 }
 0x375   :  { %v452_v14 = vmul.f32 %v2626_v12, %v3406_v39  ;;  %v2628_v10 = vpop.eup %2627  ;;  %v2192_v39 = vld [vmem:[#allocation11] ss:$0 sm:$0xff] }
 0x376   :  { %v639_v11 = vmul.f32 %v2628_v10, %v3408_v43  ;;  %v2191_v43 = vld [vmem:[#allocation13] ss:$0 sm:$0xff] }
 0x3cf   :  { %v475_v13 = vpop.permute.xlu1 %474 }
 0x3d0   :  { %v662_v15 = vpop.permute.xlu0 %661  ;;  %v477_v17 = vadd.f32 %v475_v13, %v452_v14 }
 0x3d1   :  { %v664_v22 = vadd.f32 %v662_v15, %v639_v11  ;;  %v1028_v11 = vld [vmem:[%s3672_s1] sm:$0xff] }
 0x3d3   :  { %v499_v16 = vpop.permute.xlu1 %498 }
 0x3d4   :  { %v501_v18 = vadd.f32 %v499_v16, %v477_v17 }
 0x3d7   :  { %v523_v19 = vpop.permute.xlu0 %522 }
 0x3d8   :  { %v3460_v20 = vadd.f32 %v523_v19, %v501_v18  ;;  %v686_v21 = vpop.permute.xlu1 %685  ;;  %v1029_v19 = vld [vmem:[%s3672_s1 + $0x8] sm:$0xff] }
 0x3d9   :  { %v688_v23 = vadd.f32 %v686_v21, %v664_v22  ;;  %v1030_v21 = vld [vmem:[%s3672_s1 + $0x10] sm:$0xff]  ;;  %v2478_v22 = vpack.c.bf16 %v1029_v19, %v1028_v11 }
 0x3da   :  { %2350 = vmatprep.mubr.msk.f32.mxu0 %vm440_vm5, %v3460_v20 }
 0x3dc   :  { %v710_v24 = vpop.permute.xlu1 %709 }
 0x3dd   :  { %v3464_v25 = vadd.f32 %v710_v24, %v688_v23  ;;  %v1031_v23 = vld [vmem:[%s3672_s1 + $0x18] sm:$0xff] }
 0x3de   :  { %v2482_v24 = vpack.c.bf16 %v1031_v23, %v1030_v21 }
 0x3df   :  { %2351 = vmatmul.mubr.msk.f32.vlgmr.msra.gmra.mrb[2].mxu0 %vm440_vm5, %v3464_v25 }
 0x4b2   :  { %v2352_v26 = vpop.f32.mrb[2].mxu0 }
 0x4b3   :  { %v791_v27 = vpop.f32.mrb[3].mxu0  ;;  %v823_v28 = vmul.f32 %v2352_v26, %v2192_v39  ;;  %v808_v35 = vmul.f32 %v2352_v26, %v2191_v43 }
 0x4b4   :  { %v2474_v29 = vpack.c.bf16 %v2352_v26, %v791_v27  ;;  %v822_v30 = vmul.f32 %v2192_v39, %v791_v27  ;;  %v807_v33 = vmul.f32 %v2191_v43, %v791_v27  ;;  %v2193_v39 = vld [vmem:[#allocation14] ss:$0 sm:$0xff] }
 0x4b5   :  { %v827_v31 = vsel %vm440_vm5, %v823_v28, 0.0  ;;  %v812_v36 = vsel %vm440_vm5, %v808_v35, 0.0 }
 0x4b6   :  { %828 = vadd.xlane.f32.xlu1 %v827_v31  ;;  %2475 = vmatprep.subr.bf16.mxu1 %v2474_v29  ;;  %v824_v32 = vsel %vm440_vm5, %v822_v30, 0.0  ;;  %v809_v34 = vsel %vm440_vm5, %v807_v33, 0.0 }
 0x4b7   :  { %2477 = vmatpush3.bf16.msra.mxu1 %v2474_v29  ;;  %825 = vadd.xlane.f32.xlu0 %v824_v32 }
 0x4b8   :  { %2479 = vmatprep.subr.bf16.mxu1 %v2478_v22 }
 0x4bb   :  { %810 = vadd.xlane.f32.xlu0 %v809_v34 }
 0x4bf   :  { %813 = vadd.xlane.f32.xlu0 %v812_v36 }
 0x543   :  { %v829_v45 = vpop.xlane.xlu1 %828 }
 0x544   :  { %v842_v46 = vrot.slane %v829_v45, %v3475_v42  ;;  %v826_v47 = vpop.xlane.xlu0 %825 }
 0x545   :  { %v837_v48 = vrot.slane %v826_v47, %v3478_v44 }
 0x547   :  { %v844_v49 = vsel %vm843_vm6, %v842_v46, %v837_v48 }
 0x548   :  { %v811_v50 = vpop.xlane.xlu0 %810 }
 0x549   :  { %v858_v51 = vadd.f32 %v844_v49, %v811_v50 }
 0x54b   :  { %vm860_vm7 = vcmp.gt.f32.partialorder %v858_v51, 0.0  ;;  %v862_v52 = vmul.f32 0.2, %v858_v51 }
 0x54c   :  { %v814_v54 = vpop.xlane.xlu0 %813 }
 0x54d   :  { %v859_v55 = vadd.f32 %v844_v49, %v814_v54  ;;  %v864_v56 = vsel %vm860_vm7, %v858_v51, %v862_v52 }
 0x54e   :  { %v866_v57 = vadd.f32 %v864_v56, %v3484_v53 }
 0x54f   :  { %vm861_vm9 = vcmp.gt.f32.partialorder %v859_v55, 0.0  ;;  %v863_v58 = vmul.f32 0.2, %v859_v55 }
 0x550   :  { %v869_v60 = vsel %vm868_vm8, %v866_v57, -inf }
 0x551   :  { %870 = vmax.xlane.f32.xlu1 %v869_v60  ;;  %v865_v61 = vsel %vm861_vm9, %v859_v55, %v863_v58 }
 0x552   :  { %v867_v62 = vadd.f32 %v865_v61, %v3488_v59 }
 0x554   :  { %v872_v63 = vsel %vm868_vm8, %v867_v62, -inf }
 0x555   :  { %873 = vmax.xlane.f32.xlu0 %v872_v63 }
 0x5de   :  { %v871_v0 = vpop.xlane.xlu1 %870 }
 0x5df   :  { %v875_v1 = vsub.f32 %v866_v57, %v871_v0 }
 0x5e1   :  { %v877_v2 = vmul.f32 1.442695, %v875_v1  ;;  %v2197_v1 = vld [vmem:[%s3674_s14] ss:$0 sm:$0xff] }
 0x5e2   :  { %v874_v3 = vpop.xlane.xlu0 %873 }
 0x5e3   :  { %2629 = vpow2.f32 %v877_v2  ;;  %v876_v6 = vsub.f32 %v867_v62, %v874_v3  ;;  %v2196_v62 = vld [vmem:[%s3673_s7] ss:$0 sm:$0xff] }
 0x5e5   :  { %v879_v7 = vmul.f32 1.442695, %v876_v6 }
 0x5e7   :  { %2631 = vpow2.f32 %v879_v7 }
 0x5ed   :  { %v2630_v8 = vpop.eup %2629 }
 0x5ee   :  { %v881_v9 = vsel %vm868_vm8, %v2630_v8, 0.0 }
 0x5ef   :  { %882 = vadd.xlane.f32.xlu1 %v881_v9 }
 0x5f1   :  { %v2632_v12 = vpop.eup %2631 }
 0x5f2   :  { %v884_v13 = vsel %vm868_vm8, %v2632_v12, 0.0 }
 0x5f3   :  { %885 = vadd.xlane.f32.xlu0 %v884_v13 }
 0x67c   :  { %v883_v14 = vpop.xlane.xlu1 %882 }
 0x67d   :  { %2633 = vrcp.f32 %v883_v14  ;;  %v2200_v14 = vld [vmem:[#allocation17] ss:$0 sm:$0xff] }
 0x680   :  { %v886_v15 = vpop.xlane.xlu0 %885 }
 0x681   :  { %2635 = vrcp.f32 %v886_v15 }
 0x687   :  { %v2634_v16 = vpop.eup %2633 }
 0x688   :  { %v889_v10 = vmul.f32 %v2634_v16, %v2630_v8 }
 0x68a   :  { %2357 = vmatprep.mubr.msk.f32.mxu1 %vm868_vm8, %v889_v10 }
 0x68b   :  { %v2636_v17 = vpop.eup %2635 }
 0x68c   :  { %v890_v18 = vmul.f32 %v2636_v17, %v2632_v12  ;;  %v2201_v12 = vld [vmem:[#allocation16] ss:$0 sm:$0xff] }
 0x68e   :  { %2358 = vmatmul.mubr.msk.f32.vlgmr.msra.gmra.mrb[2].mxu1 %vm868_vm8, %v890_v18 }
 0x68f   :  { %2481 = vmatpush3.bf16.msra.mxu1 %v2478_v22 }
 0x690   :  { %2483 = vmatprep.subr.bf16.mxu1 %v2482_v24 }
 0x693   :  { %2485 = vmatpush3.bf16.msra.mxu1 %v2482_v24 }
 0x761   :  { %v2359_v26 = vpop.f32.mrb[2].mxu1 }
 0x762   :  { %v3501_v27 = vadd.f32 %v2359_v26, %v2193_v39  ;;  %v970_v28 = vpop.f32.mrb[3].mxu1 }
 0x763   :  { %v3503_v43 = vadd.f32 %v2193_v39, %v970_v28 }
 0x764   :  { %v980_v29 = vsel %vm440_vm5, %v3501_v27, 0.0 }
 0x765   :  { %v979_v30 = vsel %vm440_vm5, %v3503_v43, 0.0 }
 0x766   :  { %v981_v31 = vadd.f32 %v980_v29, %v979_v30 }
 0x768   :  { %v982_v32 = vrot.slane %v981_v31, 4 }
 0x76a   :  { %v983_v33 = vadd.f32 %v982_v32, %v981_v31 }
 0x76c   :  { %v984_v34 = vrot.slane %v983_v33, 2 }
 0x76e   :  { %v985_v35 = vadd.f32 %v984_v34, %v983_v33 }
 0x770   :  { %v986_v36 = vrot.slane %v985_v35, 1 }
 0x772   :  { %v987_v37 = vadd.f32 %v986_v36, %v985_v35 }
 0x774   :  { %v989_v40 = vmul.f32 0.0625, %v987_v37 }
 0x776   :  { %v990_v41 = vsub.f32 %v3503_v43, %v989_v40  ;;  %v991_v45 = vsub.f32 %v3501_v27, %v989_v40 }
 0x778   :  { %v992_v46 = vmul.f32 %v990_v41, %v990_v41  ;;  %v993_v47 = vmul.f32 %v991_v45, %v991_v45 }
 0x77a   :  { %v994_v48 = vsel %vm440_vm5, %v992_v46, 0.0  ;;  %v995_v49 = vsel %vm440_vm5, %v993_v47, 0.0 }
 0x77b   :  { %v996_v50 = vadd.f32 %v995_v49, %v994_v48 }
 0x77d   :  { %v997_v51 = vrot.slane %v996_v50, 4 }
 0x77f   :  { %v998_v52 = vadd.f32 %v997_v51, %v996_v50 }
 0x781   :  { %v999_v54 = vrot.slane %v998_v52, 2 }
 0x783   :  { %v1000_v55 = vadd.f32 %v999_v54, %v998_v52 }
 0x785   :  { %v1001_v56 = vrot.slane %v1000_v55, 1 }
 0x787   :  { %v1002_v57 = vadd.f32 %v1001_v56, %v1000_v55 }
 0x789   :  { %v1003_v58 = vmul.f32 0.0625, %v1002_v57 }
 0x78b   :  { %v1004_v60 = vadd.f32 1e-05, %v1003_v58 }
 0x78d   :  { %2637 = vrsqrt.f32 %v1004_v60 }
 0x797   :  { %v2638_v61 = vpop.eup %2637 }
 0x798   :  { %v1006_v63 = vmul.f32 %v2638_v61, %v990_v41  ;;  %v1007_v0 = vmul.f32 %v2638_v61, %v991_v45 }
 0x79a   :  { %v1015_v2 = vmul.f32 %v2196_v62, %v1006_v63  ;;  %v1016_v3 = vmul.f32 %v2196_v62, %v1007_v0 }
 0x79c   :  { %v1024_v6 = vadd.f32 %v2197_v1, %v1015_v2  ;;  %v1025_v7 = vadd.f32 %v2197_v1, %v1016_v3  ;;  %v1329_v1 = vld [vmem:[#allocation20] sm:$0xff]  ;;  %v1330_v2 = vld [vmem:[#allocation20 + $0x8] sm:$0xff]  ;;  %v1331_v3 = vld [vmem:[#allocation20 + $0x10] sm:$0xff] }
 0x79e   :  { %v1026_v8 = vmax.f32 %v1024_v6, 0.0  ;;  %v1027_v9 = vmax.f32 %v1025_v7, 0.0  ;;  %v2490_v6 = vpack.c.bf16 %v1330_v2, %v1329_v1  ;;  %v1332_v7 = vld [vmem:[#allocation20 + $0x18] sm:$0xff] }
 0x7a0   :  { %2368 = vmatprep.mubr.msk.f32.mxu1 %vm440_vm5, %v1026_v8  ;;  %v2494_v8 = vpack.c.bf16 %v1332_v7, %v1331_v3 }
 0x7a1   :  { %2369 = vmatmul.mubr.msk.f32.vlgmr.msra.gmra.mrb[4].mxu1 %vm440_vm5, %v1027_v9  ;;  %v2202_v9 = vld [vmem:[#allocation19] ss:$0 sm:$0xff] }
 0x874   :  { %v2370_v13 = vpop.f32.mrb[4].mxu1 }
 0x875   :  { %v1104_v15 = vpop.f32.mrb[5].mxu1  ;;  %v1136_v16 = vmul.f32 %v2370_v13, %v2201_v12  ;;  %v1121_v11 = vmul.f32 %v2370_v13, %v2200_v14 }
 0x876   :  { %v2486_v10 = vpack.c.bf16 %v2370_v13, %v1104_v15  ;;  %v1135_v17 = vmul.f32 %v2201_v12, %v1104_v15  ;;  %v1120_v21 = vmul.f32 %v2200_v14, %v1104_v15 }
 0x877   :  { %v1140_v18 = vsel %vm440_vm5, %v1136_v16, 0.0  ;;  %v1125_v22 = vsel %vm440_vm5, %v1121_v11, 0.0 }
 0x878   :  { %1141 = vadd.xlane.f32.xlu0 %v1140_v18  ;;  %2487 = vmatprep.subr.bf16.mxu0 %v2486_v10  ;;  %v1137_v19 = vsel %vm440_vm5, %v1135_v17, 0.0  ;;  %v1122_v23 = vsel %vm440_vm5, %v1120_v21, 0.0 }
 0x879   :  { %2489 = vmatpush3.bf16.msra.mxu0 %v2486_v10  ;;  %1138 = vadd.xlane.f32.xlu1 %v1137_v19 }
 0x87a   :  { %2491 = vmatprep.subr.bf16.mxu0 %v2490_v6 }
 0x87c   :  { %1126 = vadd.xlane.f32.xlu0 %v1125_v22 }
 0x87d   :  { %1123 = vadd.xlane.f32.xlu1 %v1122_v23 }
 0x905   :  { %v1142_v24 = vpop.xlane.xlu0 %1141 }
 0x906   :  { %v1152_v39 = vrot.slane %v1142_v24, %v3475_v42  ;;  %v1139_v26 = vpop.xlane.xlu1 %1138 }
 0x907   :  { %v1148_v28 = vrot.slane %v1139_v26, %v3478_v44 }
 0x909   :  { %v1127_v29 = vpop.xlane.xlu0 %1126  ;;  %v1153_v30 = vsel %vm843_vm6, %v1152_v39, %v1148_v28 }
 0x90a   :  { %v1162_v31 = vadd.f32 %v1153_v30, %v1127_v29  ;;  %v1124_v32 = vpop.xlane.xlu1 %1123 }
 0x90b   :  { %v1161_v33 = vadd.f32 %v1153_v30, %v1124_v32 }
 0x90c   :  { %vm1164_vm10 = vcmp.gt.f32.partialorder %v1162_v31, 0.0  ;;  %v1166_v34 = vmul.f32 0.2, %v1162_v31 }
 0x90d   :  { %vm1163_vm11 = vcmp.gt.f32.partialorder %v1161_v33, 0.0  ;;  %v1165_v35 = vmul.f32 0.2, %v1161_v33 }
 0x90e   :  { %v1168_v36 = vsel %vm1164_vm10, %v1162_v31, %v1166_v34 }
 0x90f   :  { %v1170_v37 = vadd.f32 %v1168_v36, %v3488_v59  ;;  %v1167_v40 = vsel %vm1163_vm11, %v1161_v33, %v1165_v35 }
 0x910   :  { %v1169_v41 = vadd.f32 %v1167_v40, %v3484_v53 }
 0x911   :  { %v1174_v45 = vsel %vm868_vm8, %v1170_v37, -inf }
 0x912   :  { %1175 = vmax.xlane.f32.xlu0 %v1174_v45  ;;  %v1171_v46 = vsel %vm868_vm8, %v1169_v41, -inf }
 0x913   :  { %1172 = vmax.xlane.f32.xlu1 %v1171_v46 }
 0x99f   :  { %v1176_v47 = vpop.xlane.xlu0 %1175 }
 0x9a0   :  { %v1178_v48 = vsub.f32 %v1170_v37, %v1176_v47  ;;  %v1173_v49 = vpop.xlane.xlu1 %1172  ;;  %v2205_v47 = vld [vmem:[%s3675_s2] ss:$0 sm:$0xff] }
 0x9a1   :  { %v1177_v50 = vsub.f32 %v1169_v41, %v1173_v49 }
 0x9a2   :  { %v1181_v51 = vmul.f32 1.442695, %v1178_v48 }
 0x9a3   :  { %v1179_v52 = vmul.f32 1.442695, %v1177_v50  ;;  %v2206_v50 = vld [vmem:[%s3676_s29] ss:$0 sm:$0xff] }
 0x9a4   :  { %2639 = vpow2.f32 %v1181_v51 }
 0x9a5   :  { %2641 = vpow2.f32 %v1179_v52 }
 0x9ae   :  { %v2640_v54 = vpop.eup %2639 }
 0x9af   :  { %v2642_v55 = vpop.eup %2641  ;;  %v1186_v56 = vsel %vm868_vm8, %v2640_v54, 0.0 }
 0x9b0   :  { %1187 = vadd.xlane.f32.xlu0 %v1186_v56  ;;  %v1183_v57 = vsel %vm868_vm8, %v2642_v55, 0.0 }
 0x9b1   :  { %1184 = vadd.xlane.f32.xlu1 %v1183_v57 }
 0xa3d   :  { %v1188_v58 = vpop.xlane.xlu0 %1187 }
 0xa3e   :  { %2643 = vrcp.f32 %v1188_v58  ;;  %v1185_v60 = vpop.xlane.xlu1 %1184  ;;  %v2210_v58 = vld [vmem:[#allocation22] ss:$0 sm:$0xff] }
 0xa3f   :  { %2645 = vrcp.f32 %v1185_v60 }
 0xa48   :  { %v2644_v61 = vpop.eup %2643 }
 0xa49   :  { %v2646_v62 = vpop.eup %2645  ;;  %v1192_v0 = vmul.f32 %v2644_v61, %v2640_v54  ;;  %v2209_v61 = vld [vmem:[#allocation23] ss:$0 sm:$0xff] }
 0xa4a   :  { %v1191_v63 = vmul.f32 %v2646_v62, %v2642_v55 }
 0xa4c   :  { %2375 = vmatprep.mubr.msk.f32.mxu0 %vm868_vm8, %v1191_v63 }
 0xa4d   :  { %2376 = vmatmul.mubr.msk.f32.vlgmr.msra.gmra.mrb[4].mxu0 %vm868_vm8, %v1192_v0 }
 0xa4e   :  { %2493 = vmatpush3.bf16.msra.mxu0 %v2490_v6 }
 0xa4f   :  { %2495 = vmatprep.subr.bf16.mxu0 %v2494_v8 }
 0xa52   :  { %2497 = vmatpush3.bf16.msra.mxu0 %v2494_v8 }
 0xa53   :  { %2505 = vmatprep.subr.bf16.mxu0 %v3076_v4 }
 0xb20   :  { %v2377_v12 = vpop.f32.mrb[4].mxu0 }
 0xb21   :  { %v3533_v13 = vadd.f32 %v2377_v12, %v2202_v9  ;;  %v1272_v14 = vpop.f32.mrb[5].mxu0 }
 0xb22   :  { %v3535_v15 = vadd.f32 %v2202_v9, %v1272_v14 }
 0xb23   :  { %v1282_v16 = vsel %vm440_vm5, %v3533_v13, 0.0 }
 0xb24   :  { %v1281_v10 = vsel %vm440_vm5, %v3535_v15, 0.0 }
 0xb25   :  { %v1283_v17 = vadd.f32 %v1282_v16, %v1281_v10 }
 0xb27   :  { %v1284_v18 = vrot.slane %v1283_v17, 4 }
 0xb29   :  { %v1285_v11 = vadd.f32 %v1284_v18, %v1283_v17 }
 0xb2b   :  { %v1286_v19 = vrot.slane %v1285_v11, 2 }
 0xb2d   :  { %v1287_v21 = vadd.f32 %v1286_v19, %v1285_v11 }
 0xb2f   :  { %v1288_v22 = vrot.slane %v1287_v21, 1 }
 0xb31   :  { %v1289_v23 = vadd.f32 %v1288_v22, %v1287_v21 }
 0xb33   :  { %v1290_v24 = vmul.f32 0.0625, %v1289_v23 }
 0xb35   :  { %v1291_v39 = vsub.f32 %v3535_v15, %v1290_v24  ;;  %v1292_v26 = vsub.f32 %v3533_v13, %v1290_v24 }
 0xb37   :  { %v1293_v28 = vmul.f32 %v1291_v39, %v1291_v39  ;;  %v1294_v29 = vmul.f32 %v1292_v26, %v1292_v26 }
 0xb39   :  { %v1295_v30 = vsel %vm440_vm5, %v1293_v28, 0.0  ;;  %v1296_v31 = vsel %vm440_vm5, %v1294_v29, 0.0  ;;  %v1583_v29 = vld [vmem:[#allocation4] sm:$0x1] }
 0xb3a   :  { %v1297_v32 = vadd.f32 %v1296_v31, %v1295_v30  ;;  %2530 = vpush %v1583_v29 }
 0xb3c   :  { %v1298_v33 = vrot.slane %v1297_v32, 4 }
 0xb3e   :  { %v1299_v34 = vadd.f32 %v1298_v33, %v1297_v32 }
 0xb40   :  { %v1300_v35 = vrot.slane %v1299_v34, 2 }
 0xb42   :  { %v1301_v36 = vadd.f32 %v1300_v35, %v1299_v34 }
 0xb44   :  { %v1302_v37 = vrot.slane %v1301_v36, 1 }
 0xb46   :  { %v1303_v40 = vadd.f32 %v1302_v37, %v1301_v36 }
 0xb48   :  { %v1304_v41 = vmul.f32 0.0625, %v1303_v40 }
 0xb4a   :  { %v1305_v45 = vadd.f32 1e-05, %v1304_v41 }
 0xb4c   :  { %2647 = vrsqrt.f32 %v1305_v45 }
 0xb56   :  { %v2648_v46 = vpop.eup %2647 }
 0xb57   :  { %v1307_v48 = vmul.f32 %v2648_v46, %v1291_v39  ;;  %v1308_v49 = vmul.f32 %v2648_v46, %v1292_v26 }
 0xb59   :  { %v1316_v51 = vmul.f32 %v2205_v47, %v1307_v48  ;;  %v1317_v52 = vmul.f32 %v2205_v47, %v1308_v49 }
 0xb5b   :  { %v1325_v54 = vadd.f32 %v2206_v50, %v1316_v51  ;;  %v1326_v55 = vadd.f32 %v2206_v50, %v1317_v52 }
 0xb5d   :  { %v1327_v56 = vmax.f32 %v1325_v54, 0.0  ;;  %v1328_v57 = vmax.f32 %v1326_v55, 0.0 }
 0xb5f   :  { %2386 = vmatprep.mubr.msk.f32.mxu0 %vm440_vm5, %v1327_v56 }
 0xb60   :  { %2387 = vmatmul.mubr.msk.f32.vlgmr.msra.gmra.mrb[6].mxu0 %vm440_vm5, %v1328_v57 }
 0xb61   :  { %2407 = vmatprep.mubr.msk.f32.mxu0 %vm3077_vm0, %v3078_v5 }
 0xb6b   :  { %s2531_s20 = spop %2530 }
 0xc33   :  { %v2388_v60 = vpop.f32.mrb[6].mxu0 }
 0xc34   :  { %v1405_v62 = vpop.f32.mrb[7].mxu0  ;;  %v1437_v63 = vmul.f32 %v2388_v60, %v2210_v58  ;;  %v1422_v3 = vmul.f32 %v2388_v60, %v2209_v61 }
 0xc35   :  { %v2498_v0 = vpack.c.bf16 %v2388_v60, %v1405_v62  ;;  %v1436_v1 = vmul.f32 %v2210_v58, %v1405_v62  ;;  %v1421_v7 = vmul.f32 %v2209_v61, %v1405_v62 }
 0xc36   :  { %v1441_v2 = vsel %vm440_vm5, %v1437_v63, 0.0  ;;  %v1426_v8 = vsel %vm440_vm5, %v1422_v3, 0.0 }
 0xc37   :  { %1442 = vadd.xlane.f32.xlu0 %v1441_v2  ;;  %2499 = vmatprep.subr.bf16.mxu1 %v2498_v0  ;;  %v1438_v6 = vsel %vm440_vm5, %v1436_v1, 0.0  ;;  %v1423_v9 = vsel %vm440_vm5, %v1421_v7, 0.0  ;;  %v2211_v1 = vld [vmem:[#allocation25] ss:$0 sm:$0xff] }
 0xc38   :  { %2501 = vmatpush3.bf16.msra.mxu1 %v2498_v0  ;;  %1439 = vadd.xlane.f32.xlu1 %v1438_v6  ;;  %v3083_v0 = vmov 0  }
 0xc39   :  { %2502 = vmatprep.subr.bf16.mxu1 %v3076_v4  ;;  %2595 = vset.pattern.permute.xlu1 %v3083_v0 }
 0xc3a   :  { %2596 = vset.pattern.permute.xlu0 %v3083_v0 }
 0xc3b   :  { %1427 = vadd.xlane.f32.xlu0 %v1426_v8 }
 0xc3c   :  { %1424 = vadd.xlane.f32.xlu1 %v1423_v9 }
 0xcc4   :  { %v1443_v12 = vpop.xlane.xlu0 %1442 }
 0xcc5   :  { %v1453_v14 = vrot.slane %v1443_v12, %v3475_v42  ;;  %v1440_v16 = vpop.xlane.xlu1 %1439 }
 0xcc6   :  { %v1449_v10 = vrot.slane %v1440_v16, %v3478_v44  ;;  %v1703_v16 = vld [vmem:[%s3677_s4] sm:$0x3f] }
 0xcc8   :  { %v1428_v17 = vpop.xlane.xlu0 %1427  ;;  %v1454_v18 = vsel %vm843_vm6, %v1453_v14, %v1449_v10  ;;  %v1696_v10 = vld [vmem:[%s3678_s10] sm:$0x3f] }
 0xcc9   :  { %v1463_v11 = vadd.f32 %v1454_v18, %v1428_v17  ;;  %v1425_v19 = vpop.xlane.xlu1 %1424 }
 0xcca   :  { %v1462_v21 = vadd.f32 %v1454_v18, %v1425_v19 }
 0xccb   :  { %vm1465_vm12 = vcmp.gt.f32.partialorder %v1463_v11, 0.0  ;;  %v1467_v22 = vmul.f32 0.2, %v1463_v11 }
 0xccc   :  { %vm1464_vm13 = vcmp.gt.f32.partialorder %v1462_v21, 0.0  ;;  %v1466_v23 = vmul.f32 0.2, %v1462_v21 }
 0xccd   :  { %v1469_v24 = vsel %vm1465_vm12, %v1463_v11, %v1467_v22 }
 0xcce   :  { %v1471_v39 = vadd.f32 %v1469_v24, %v3488_v59  ;;  %v1468_v26 = vsel %vm1464_vm13, %v1462_v21, %v1466_v23  ;;  %v2214_v59 = vld [vmem:[#allocation26] ss:$0 sm:$0xff]  ;;  %v1599_v21 = vstv %s2531_s20 }
 0xccf   :  { %v1470_v28 = vadd.f32 %v1468_v26, %v3484_v53  ;;  %v1592_v40 = vmul.f32 %v2214_v59, %v3464_v25  ;;  %v1591_v45 = vmul.f32 %v2214_v59, %v3460_v20  ;;  %v1619_v47 = vmul.f32 %v2214_v59, %v3501_v27 }
 0xcd0   :  { %v1475_v42 = vsel %vm868_vm8, %v1471_v39, -inf  ;;  %v1618_v49 = vmul.f32 %v2214_v59, %v3503_v43  ;;  %v1645_v51 = vmul.f32 %v2214_v59, %v3533_v13  ;;  %v1644_v54 = vmul.f32 %v2214_v59, %v3535_v15 }
 0xcd1   :  { %1476 = vmax.xlane.f32.xlu0 %v1475_v42  ;;  %v1472_v44 = vsel %vm868_vm8, %v1470_v28, -inf  ;;  %v1596_v46 = vsel %vm440_vm5, %v1592_v40, 0.0  ;;  %v1593_v48 = vsel %vm440_vm5, %v1591_v45, 0.0  ;;  %v1623_v50 = vsel %vm440_vm5, %v1619_v47, 0.0 }
 0xcd2   :  { %1473 = vmax.xlane.f32.xlu1 %v1472_v44  ;;  %v1620_v52 = vsel %vm440_vm5, %v1618_v49, 0.0  ;;  %v1649_v55 = vsel %vm440_vm5, %v1645_v51, 0.0  ;;  %v1646_v56 = vsel %vm440_vm5, %v1644_v54, 0.0 }
 0xd5e   :  { %v1477_v30 = vpop.xlane.xlu0 %1476 }
 0xd5f   :  { %v1479_v31 = vsub.f32 %v1471_v39, %v1477_v30  ;;  %v1474_v32 = vpop.xlane.xlu1 %1473 }
 0xd60   :  { %v1478_v33 = vsub.f32 %v1470_v28, %v1474_v32 }
 0xd61   :  { %v1482_v34 = vmul.f32 1.442695, %v1479_v31 }
 0xd62   :  { %v1480_v35 = vmul.f32 1.442695, %v1478_v33 }
 0xd63   :  { %2649 = vpow2.f32 %v1482_v34 }
 0xd64   :  { %2651 = vpow2.f32 %v1480_v35 }
 0xd6d   :  { %v2650_v36 = vpop.eup %2649 }
 0xd6e   :  { %v2652_v37 = vpop.eup %2651  ;;  %v1487_v53 = vsel %vm868_vm8, %v2650_v36, 0.0 }
 0xd6f   :  { %1488 = vadd.xlane.f32.xlu0 %v1487_v53  ;;  %v1484_v41 = vsel %vm868_vm8, %v2652_v37, 0.0 }
 0xd70   :  { %1485 = vadd.xlane.f32.xlu1 %v1484_v41 }
 0xd73   :  { %1597 = vadd.xlane.f32.xlu0 %v1596_v46 }
 0xd74   :  { %1594 = vadd.xlane.f32.xlu1 %v1593_v48 }
 0xd77   :  { %1624 = vadd.xlane.f32.xlu0 %v1623_v50 }
 0xd78   :  { %1621 = vadd.xlane.f32.xlu1 %v1620_v52 }
 0xd7b   :  { %1650 = vadd.xlane.f32.xlu0 %v1649_v55 }
 0xd7c   :  { %1647 = vadd.xlane.f32.xlu1 %v1646_v56 }
 0xdfc   :  { %v1489_v57 = vpop.xlane.xlu0 %1488 }
 0xdfd   :  { %2653 = vrcp.f32 %v1489_v57  ;;  %v1486_v58 = vpop.xlane.xlu1 %1485 }
 0xdfe   :  { %2655 = vrcp.f32 %v1486_v58 }
 0xe00   :  { %v1598_v17 = vpop.xlane.xlu0 %1597 }
 0xe01   :  { %v1595_v18 = vpop.xlane.xlu1 %1594  ;;  %v1601_v22 = vadd.f32 %v1599_v21, %v1598_v17 }
 0xe02   :  { %v1600_v23 = vadd.f32 %v1599_v21, %v1595_v18 }
 0xe03   :  { %v2216_v42 = vmul.f32 -1.442695, %v1601_v22 }
 0xe04   :  { %v1625_v11 = vpop.xlane.xlu0 %1624  ;;  %v2215_v29 = vmul.f32 -1.442695, %v1600_v23 }
 0xe05   :  { %v1622_v19 = vpop.xlane.xlu1 %1621  ;;  %v1627_v39 = vadd.f32 %v1625_v11, %v1599_v21  ;;  %2657 = vpow2.f32 %v2216_v42  ;;  %v1901_v42 = vld [vmem:[%s3679_s16 + $0x8] sm:$0xff] }
 0xe06   :  { %v1626_v28 = vadd.f32 %v1622_v19, %v1599_v21  ;;  %2659 = vpow2.f32 %v2215_v29  ;;  %v1902_v29 = vld [vmem:[%s3679_s16 + $0x10] sm:$0xff] }
 0xe07   :  { %v2654_v60 = vpop.eup %2653  ;;  %v2218_v31 = vmul.f32 -1.442695, %v1627_v39 }
 0xe08   :  { %v2656_v61 = vpop.eup %2655  ;;  %v1493_v63 = vmul.f32 %v2654_v60, %v2650_v36  ;;  %v1651_v24 = vpop.xlane.xlu0 %1650  ;;  %v2217_v32 = vmul.f32 -1.442695, %v1626_v28  ;;  %v1900_v28 = vld [vmem:[%s3679_s16] sm:$0xff] }
 0xe09   :  { %v1492_v62 = vmul.f32 %v2656_v61, %v2652_v37  ;;  %v1648_v26 = vpop.xlane.xlu1 %1647  ;;  %v1653_v44 = vadd.f32 %v1651_v24, %v1599_v21  ;;  %2661 = vpow2.f32 %v2218_v31 }
 0xe0a   :  { %v1652_v30 = vadd.f32 %v1648_v26, %v1599_v21  ;;  %2663 = vpow2.f32 %v2217_v32  ;;  %v1905_v32 = vld [vmem:[%s3679_s16 + $0x28] sm:$0xff] }
 0xe0b   :  { %2393 = vmatprep.mubr.msk.f32.mxu1 %vm868_vm8, %v1492_v62  ;;  %v2220_v33 = vmul.f32 -1.442695, %v1653_v44  ;;  %v2509_v44 = vpack.c.bf16 %v1901_v42, %v1900_v28 }
 0xe0c   :  { %2394 = vmatmul.mubr.msk.f32.vlgmr.msra.gmra.mrb[6].mxu1 %vm868_vm8, %v1493_v63  ;;  %v2219_v34 = vmul.f32 -1.442695, %v1652_v30  ;;  %v1903_v30 = vld [vmem:[%s3679_s16 + $0x18] sm:$0xff] }
 0xe0d   :  { %2400 = vmatprep.mubr.msk.f32.mxu1 %vm3077_vm0, %v3078_v5  ;;  %2665 = vpow2.f32 %v2220_v33  ;;  %v2512_v31 = vpack.c.bf16 %v1903_v30, %v1902_v29 }
 0xe0e   :  { %2667 = vpow2.f32 %v2219_v34  ;;  %v1906_v34 = vld [vmem:[%s3679_s16 + $0x30] sm:$0xff] }
 0xedf   :  { %v2395_v2 = vpop.f32.mrb[6].mxu1 }
 0xee0   :  { %v3581_v3 = vadd.f32 %v2395_v2, %v2211_v1  ;;  %v1573_v6 = vpop.f32.mrb[7].mxu1 }
 0xee1   :  { %v3583_v7 = vadd.f32 %v2211_v1, %v1573_v6 }
 0xee2   :  { %v1671_v8 = vmul.f32 %v2214_v59, %v3581_v3 }
 0xee3   :  { %v1670_v9 = vmul.f32 %v2214_v59, %v3583_v7  ;;  %v2658_v59 = vpop.eup %2657 }
 0xee4   :  { %v1675_v12 = vsel %vm440_vm5, %v1671_v8, 0.0  ;;  %v2660_v53 = vpop.eup %2659  ;;  %v1609_v47 = vadd.f32 1.0, %v2658_v59 }
 0xee5   :  { %1676 = vadd.xlane.f32.xlu0 %v1675_v12  ;;  %v1672_v14 = vsel %vm440_vm5, %v1670_v9, 0.0  ;;  %v2662_v41 = vpop.eup %2661  ;;  %v1608_v50 = vadd.f32 1.0, %v2660_v53 }
 0xee6   :  { %1673 = vadd.xlane.f32.xlu1 %v1672_v14  ;;  %v2664_v46 = vpop.eup %2663  ;;  %v1635_v52 = vadd.f32 1.0, %v2662_v41 }
 0xee7   :  { %v2666_v49 = vpop.eup %2665  ;;  %v1634_v54 = vadd.f32 1.0, %v2664_v46 }
 0xee8   :  { %v2668_v51 = vpop.eup %2667  ;;  %v1661_v55 = vadd.f32 1.0, %v2666_v49 }
 0xee9   :  { %v1660_v56 = vadd.f32 1.0, %v2668_v51 }
 0xef7   :  { %1705 = vperm.xlu1 %2595, %v1703_v16  }
 0xefb   :  { %1698 = vperm.xlu0 %2596, %v1696_v10  }
 0xf72   :  { %v1677_v35 = vpop.xlane.xlu0 %1676 }
 0xf73   :  { %v1679_v36 = vadd.f32 %v1677_v35, %v1599_v21  ;;  %v1674_v37 = vpop.xlane.xlu1 %1673  ;;  %v1907_v35 = vld [vmem:[%s3679_s16 + $0x38] sm:$0xff] }
 0xf74   :  { %v1678_v40 = vadd.f32 %v1674_v37, %v1599_v21  ;;  %v2518_v59 = vpack.c.bf16 %v1907_v35, %v1906_v34 }
 0xf75   :  { %v2222_v45 = vmul.f32 -1.442695, %v1679_v36 }
 0xf76   :  { %v2221_v48 = vmul.f32 -1.442695, %v1678_v40 }
 0xf77   :  { %2669 = vpow2.f32 %v2222_v45  ;;  %v1706_v24 = vpop.permute.xlu1 %1705 }
 0xf78   :  { %2671 = vpow2.f32 %v2221_v48  ;;  %vm1707_vm14 = vcmp.eq.s32.totalorder %v3472_v38, %v1706_v24 }
 0xf79   :  { %2673 = vrcp.f32 %v1609_v47 }
 0xf7a   :  { %2675 = vrcp.f32 %v1608_v50 }
 0xf7b   :  { %2677 = vrcp.f32 %v1635_v52 }
 0xf7c   :  { %2679 = vrcp.f32 %v1634_v54 }
 0xf7d   :  { %2681 = vrcp.f32 %v1661_v55 }
 0xf7e   :  { %2683 = vrcp.f32 %v1660_v56 }
 0xf81   :  { %v2670_v57 = vpop.eup %2669 }
 0xf82   :  { %v2672_v58 = vpop.eup %2671  ;;  %v1687_v60 = vadd.f32 1.0, %v2670_v57 }
 0xf83   :  { %v1686_v61 = vadd.f32 1.0, %v2672_v58  ;;  %v2674_v62 = vpop.eup %2673 }
 0xf84   :  { %2685 = vrcp.f32 %v1687_v60  ;;  %v2676_v63 = vpop.eup %2675  ;;  %v1615_v12 = vmul.f32 %v2674_v62, %v3464_v25 }
 0xf85   :  { %2687 = vrcp.f32 %v1686_v61  ;;  %v2678_v0 = vpop.eup %2677  ;;  %v1614_v16 = vmul.f32 %v2676_v63, %v3460_v20 }
 0xf86   :  { %v2680_v1 = vpop.eup %2679  ;;  %v1641_v8 = vmul.f32 %v2678_v0, %v3501_v27  ;;  %v2227_v0 = vld [vmem:[%s3680_s15] ss:$0 sm:$0xff] }
 0xf87   :  { %v2682_v2 = vpop.eup %2681  ;;  %v1640_v9 = vmul.f32 %v2680_v1, %v3503_v43  ;;  %v1699_v43 = vpop.permute.xlu0 %1698 }
 0xf88   :  { %v2684_v6 = vpop.eup %2683  ;;  %v1667_v14 = vmul.f32 %v2682_v2, %v3533_v13  ;;  %v1643_v17 = vadd.f32 %v1641_v8, %v1615_v12  ;;  %vm1700_vm15 = vcmp.eq.s32.totalorder %v3472_v38, %v1699_v43  ;;  %v2224_v13 = vsel %vm1707_vm14, 1.0, %v3078_v5  ;;  %v2228_v2 = vld [vmem:[%s3681_s18] ss:$0 sm:$0xff]  ;;  %v2031_v12 = vld [vmem:[%s3265_s5 + $0x8] sm:$0xff] }
 0xf89   :  { %v1666_v10 = vmul.f32 %v2684_v6, %v3535_v15  ;;  %v1642_v11 = vadd.f32 %v1640_v9, %v1614_v16  ;;  %v2223_v15 = vsel %vm1700_vm15, 1.0, %v3078_v5  ;;  %v2030_v9 = vld [vmem:[%s3265_s5] sm:$0xff]  ;;  %v2032_v16 = vld [vmem:[%s3265_s5 + $0x10] sm:$0xff] }
 0xf8a   :  { %v1669_v21 = vadd.f32 %v1667_v14, %v1643_v17  ;;  %v2521_v14 = vpack.c.bf16 %v2031_v12, %v2030_v9 }
 0xf8b   :  { %v1668_v23 = vadd.f32 %v1666_v10, %v1642_v11  ;;  %v2033_v10 = vld [vmem:[%s3265_s5 + $0x18] sm:$0xff]  ;;  %s3684_s5 = sld [smem:[#allocation56_spill]] }
 0xf8c   :  { %v2524_v17 = vpack.c.bf16 %v2033_v10, %v2032_v16 }
 0xf8e   :  { %v2686_v18 = vpop.eup %2685 }
 0xf8f   :  { %v2688_v19 = vpop.eup %2687  ;;  %v1693_v22 = vmul.f32 %v2686_v18, %v3581_v3  ;;  %v2229_v18 = vld [vmem:[%s3682_s12] ss:$0 sm:$0xff] }
 0xf90   :  { %v1692_v27 = vmul.f32 %v2688_v19, %v3583_v7 }
 0xf91   :  { %v1695_v39 = vadd.f32 %v1693_v22, %v1669_v21  ;;  %v2232_v34 = vld [vmem:[%s3684_s5] ss:$0 sm:$0xff] }
 0xf92   :  { %v1694_v25 = vadd.f32 %v1692_v27, %v1668_v23 }
 0xf94   :  { %v2503_v20 = vpack.c.bf16 %v1695_v39, %v1694_v25 }
 0xf96   :  { %2504 = vmatpush3.bf16.msra.mxu1 %v2503_v20  ;;  %2507 = vmatpush3.bf16.msra.mxu0 %v2503_v20 }
 0xf97   :  { %2508 = vmatprep.subr.bf16.mxu1 %v3076_v4  ;;  %2520 = vmatprep.subr.bf16.mxu0 %v3076_v4 }
 0xf99   :  { %2408 = vmatmul.mubr.msk.f32.vlgmr.msra.gmra.mrb[8].mxu0 %vm868_vm8, %v2224_v13  ;;  %2401 = vmatmul.mubr.msk.f32.vlgmr.msra.gmra.mrb[8].mxu1 %vm868_vm8, %v2223_v15 }
 0xf9a   :  { %2426 = vmatprep.mubr.msk.f32.mxu1 %vm3077_vm0, %v3078_v5  ;;  %2437 = vmatprep.mubr.msk.f32.mxu0 %vm3077_vm0, %v3078_v5  ;;  %v1904_v5 = vld [vmem:[%s3679_s16 + $0x20] sm:$0xff]  ;;  %vm1861_vm0 = vcmask 521216  }
 0xf9b   :  { %2510 = vmatpush3.bf16.msra.mxu1 %v2509_v44  ;;  %v2515_v33 = vpack.c.bf16 %v1905_v32, %v1904_v5  ;;  %2522 = vmatpush3.bf16.msra.mxu0 %v2521_v14  ;;  %v2231_v32 = vld [vmem:[%s3683_s24] ss:$0 sm:$0xff] }
 0xf9c   :  { %2511 = vmatprep.subr.bf16.mxu1 %v3076_v4  ;;  %2523 = vmatprep.subr.bf16.mxu0 %v3076_v4 }
 0xf9f   :  { %2513 = vmatpush3.bf16.msra.mxu1 %v2512_v31  ;;  %2525 = vmatpush3.bf16.msra.mxu0 %v2524_v17 }
 0xfa0   :  { %2514 = vmatprep.subr.bf16.mxu1 %v3076_v4 }
 0xfa3   :  { %2516 = vmatpush3.bf16.msra.mxu1 %v2515_v33 }
 0xfa4   :  { %2517 = vmatprep.subr.bf16.mxu1 %v3076_v4 }
 0xfa7   :  { %2519 = vmatpush3.bf16.msra.mxu1 %v2518_v59 }
0x106c   :  { %v1852_v38 = vpop.f32.mrb[8].mxu0  ;;  %v1779_v3 = vpop.f32.mrb[8].mxu1 }
0x106d   :  { %1857 = vrot.lane.b32.xlu1 %v1852_v38, %s3079_s9  ;;  %v2409_v7 = vpop.f32.mrb[9].mxu0  ;;  %v2402_v26 = vpop.f32.mrb[9].mxu1 }
0x10df   :  { %v1858_v36 = vpop.permute.xlu1 %1857 }
0x10e0   :  { %v1860_v37 = vsel %vm440_vm5, %v1779_v3, %v1858_v36  ;;  %v2233_v36 = vld [vmem:[#allocation5] ss:$0 sm:$0xff] }
0x10e1   :  { %v1862_v53 = vsel %vm1861_vm0, %v1860_v37, 0.0 }
0x10e2   :  { %v1863_v40 = vrot.slane %v1862_v53, 4 }
0x10e4   :  { %v1864_v41 = vadd.f32 %v1863_v40, %v1862_v53 }
0x10e6   :  { %v1865_v45 = vrot.slane %v1864_v41, 2 }
0x10e8   :  { %v1866_v46 = vadd.f32 %v1865_v45, %v1864_v41 }
0x10ea   :  { %v1867_v47 = vrot.slane %v1866_v46, 1 }
0x10ec   :  { %v1868_v48 = vadd.f32 %v1867_v47, %v1866_v46 }
0x10ee   :  { %v1870_v49 = vmul.f32 0.16666667, %v1868_v48 }
0x10f0   :  { %v1871_v50 = vsub.f32 %v1860_v37, %v1870_v49 }
0x10f2   :  { %v1872_v51 = vmul.f32 %v1871_v50, %v1871_v50 }
0x10f4   :  { %v1873_v52 = vsel %vm1861_vm0, %v1872_v51, 0.0 }
0x10f5   :  { %v1874_v54 = vrot.slane %v1873_v52, 4 }
0x10f7   :  { %v1875_v55 = vadd.f32 %v1874_v54, %v1873_v52 }
0x10f9   :  { %v1876_v56 = vrot.slane %v1875_v55, 2 }
0x10fb   :  { %v1877_v57 = vadd.f32 %v1876_v56, %v1875_v55 }
0x10fd   :  { %v1878_v58 = vrot.slane %v1877_v57, 1 }
0x10ff   :  { %v1879_v60 = vadd.f32 %v1878_v58, %v1877_v57 }
0x1101   :  { %v1880_v61 = vmul.f32 0.16666667, %v1879_v60 }
0x1103   :  { %v1881_v62 = vadd.f32 1e-05, %v1880_v61 }
0x1105   :  { %2689 = vrsqrt.f32 %v1881_v62 }
0x110f   :  { %v2690_v63 = vpop.eup %2689 }
0x1110   :  { %v1883_v1 = vmul.f32 %v2690_v63, %v1871_v50 }
0x1112   :  { %v1891_v6 = vmul.f32 %v2227_v0, %v1883_v1 }
0x1114   :  { %v1899_v8 = vadd.f32 %v2228_v2, %v1891_v6 }
0x1116   :  { %2427 = vmatmul.mubr.msk.f32.vlgmr.msra.gmra.mrb[10].mxu1 %vm1915_vm1, %v1899_v8 }
0x11e9   :  { %v1985_v11 = vpop.f32.mrb[10].mxu1 }
0x11ea   :  { %v1986_v19 = vadd.f32 %v2229_v18, %v1985_v11  ;;  %v2428_v21 = vpop.f32.mrb[11].mxu1 }
0x11ec   :  { %vm1989_vm2 = vcmp.gt.f32.partialorder %v1986_v19, 0.0  ;;  %v1990_v22 = vmul.f32 0.01, %v1986_v19 }
0x11ee   :  { %v1991_v23 = vsel %vm1989_vm2, %v1986_v19, %v1990_v22 }
0x11ef   :  { %v1993_v27 = vsel %vm1992_vm3, %v1991_v23, 0.0 }
0x11f0   :  { %v1994_v24 = vrot.slane %v1993_v27, 4 }
0x11f2   :  { %v1995_v43 = vadd.f32 %v1994_v24, %v1993_v27 }
0x11f4   :  { %v1996_v39 = vrot.slane %v1995_v43, 2 }
0x11f6   :  { %v1997_v25 = vadd.f32 %v1996_v39, %v1995_v43 }
0x11f8   :  { %v1998_v20 = vrot.slane %v1997_v25, 1 }
0x11fa   :  { %v1999_v4 = vadd.f32 %v1998_v20, %v1997_v25 }
0x11fc   :  { %v2000_v13 = vmul.f32 0.16666667, %v1999_v4 }
0x11fe   :  { %v2001_v15 = vsub.f32 %v1991_v23, %v2000_v13 }
0x1200   :  { %v2002_v38 = vmul.f32 %v2001_v15, %v2001_v15 }
0x1202   :  { %v2003_v3 = vsel %vm1992_vm3, %v2002_v38, 0.0 }
0x1203   :  { %v2004_v7 = vrot.slane %v2003_v3, 4 }
0x1205   :  { %v2005_v26 = vadd.f32 %v2004_v7, %v2003_v3 }
0x1207   :  { %v2006_v28 = vrot.slane %v2005_v26, 2 }
0x1209   :  { %v2007_v42 = vadd.f32 %v2006_v28, %v2005_v26 }
0x120b   :  { %v2008_v44 = vrot.slane %v2007_v42, 1 }
0x120d   :  { %v2009_v29 = vadd.f32 %v2008_v44, %v2007_v42 }
0x120f   :  { %v2010_v30 = vmul.f32 0.16666667, %v2009_v29 }
0x1211   :  { %v2011_v31 = vadd.f32 1e-05, %v2010_v30 }
0x1213   :  { %2691 = vrsqrt.f32 %v2011_v31 }
0x121d   :  { %v2692_v5 = vpop.eup %2691 }
0x121e   :  { %v2013_v33 = vmul.f32 %v2692_v5, %v2001_v15 }
0x1220   :  { %v2021_v35 = vmul.f32 %v2231_v32, %v2013_v33 }
0x1222   :  { %v2029_v59 = vadd.f32 %v2232_v34, %v2021_v35 }
0x1224   :  { %2438 = vmatmul.mubr.msk.f32.vlgmr.msra.gmra.mrb[10].mxu0 %vm440_vm5, %v2029_v59 }
0x12f7   :  { %v2110_v37 = vpop.f32.mrb[10].mxu0 }
0x12f8   :  { %v2111_v53 = vadd.f32 %v2233_v36, %v2110_v37  ;;  %v2439_v40 = vpop.f32.mrb[11].mxu0 }
0x12fa   :  { %v2235_v41 = vmul.f32 -1.442695, %v2111_v53 }
0x12fc   :  { %2693 = vpow2.f32 %v2235_v41 }
0x1306   :  { %v2694_v45 = vpop.eup %2693 }
0x1307   :  { %v2117_v46 = vadd.f32 1.0, %v2694_v45 }
0x1309   :  { %2695 = vrcp.f32 %v2117_v46 }
0x1313   :  { %v2696_v47 = vpop.eup %2695 }
0x1314   :  { %2121 = vst.msk [vmem:[%s3270_s8] sm:$0x3f] %vm2120_vm4, %v2696_v47 }
0x1315   :  { %2126 = vsyncpa [#allocation7], 1 }
0x1316   :  { %2127 = vsyncpa [#allocation9], 1 }
0x1317   :  { %2128 = vsyncpa [#allocation12], 1 }
0x1318   :  { %2129 = vsyncpa [#allocation15], 1 }
0x1319   :  { %2130 = vsyncpa [#allocation18], 1 }
0x131a   :  { %2131 = vsyncpa [#allocation21], 1 }
0x131b   :  { %2132 = vsyncpa [#allocation24], 1 }
0x131c   :  { %2133 = vsyncpa [#allocation27], 1 }

</bundles_post_ra>
